<compile_context>
chip_gen: v7x
topology: tpu7x:2x2x1
jax: 0.10.0
libtpu: 0.0.40
codegen_flags: <defaults>
</compile_context>

<pallas_src>
import functools
import math

import jax
import jax.numpy as jnp
from jax.experimental import pallas as pl
from jax.experimental.pallas import tpu as pltpu

# Finite "-inf": exp(_MASK_VALUE - max) underflows to exactly 0 in f32 (identical
# to masked_fill(-inf) whenever a row has >= 1 valid entry) but never produces
# NaN on fully-masked (S-padded) rows.
_MASK_VALUE = -1e30


def _attn_tile_kernel(qk_ref, enc_ref, len_ref, wvt_ref, out_ref, *, scale):
    """One S-tile of the (batch-axis-softmax) Bahdanau attention.

    qk_ref  : (B, H)       fused projection  emb @ Wq^T @ Wk       (resident)
    enc_ref : (B, TS, H)   batch-first encoder outputs, this tile  (streamed)
    len_ref : (B, 1) int32 per-batch valid source lengths          (resident)
    wvt_ref : (H, H)       Wv^T                                    (resident)
    out_ref : (1, B, H) f32  Wv-projected partial context for this tile
    """
    s_idx = pl.program_id(0)
    B, TS, H = enc_ref.shape

    enc = enc_ref[...]                                   # (B, TS, H) storage dtype
    qk = qk_ref[...]                                     # (B, H)

    # scores[b, t] = <qk[b], enc[b, t]> * scale   -- batched MXU matmul, f32 acc.
    scores = jnp.einsum('bqh,bth->bqt', qk[:, None, :], enc,
                        preferred_element_type=jnp.float32)[:, 0, :]   # (B, TS)
    scores = scores * scale

    # Padding mask rebuilt in-kernel from per-batch lengths (no (S,B) mask stream).
    pos = s_idx * TS + jax.lax.broadcasted_iota(jnp.int32, (B, TS), 1)
    scores = jnp.where(pos >= len_ref[...], _MASK_VALUE, scores)

    # F.softmax(energies, -1) in the PyTorch code acts on (S, B) energies, i.e.
    # it normalizes over the BATCH axis.  Scores here are (B, TS) => axis 0.
    m = jnp.max(scores, axis=0, keepdims=True)
    p = jnp.exp(scores - m)
    a = p / jnp.sum(p, axis=0, keepdims=True)                          # (B, TS) f32

    # Partial context for this tile, then the (linear) Wv projection:
    #   sum_t a[b,t] * (enc[b,t] @ Wv^T) == (sum_t a[b,t] * enc[b,t]) @ Wv^T
    ctx = jnp.einsum('bqt,bth->bqh', a.astype(enc.dtype)[:, None, :], enc,
                     preferred_element_type=jnp.float32)[:, 0, :]      # (B, H) f32
    out_ref[0] = jnp.dot(ctx.astype(wvt_ref.dtype), wvt_ref[...],
                         preferred_element_type=jnp.float32)           # (B, H) f32


def _round_up(x, m):
    return (x + m - 1) // m * m


def bahdanau_attention(emb, enc_outs, lengths, wq, wk, wv,
                       *, block_s=128, storage_dtype=jnp.float32):
    """Pallas forward of Attention(method='bahdanau') with a padding mask.

    emb      : (1, B, E)  decoder embedding, single target step (sequence-first)
    enc_outs : (S, B, H)  encoder outputs (sequence-first, as in PyTorch)
    lengths  : (B,) int   valid source lengths; position s of batch b is masked
                          iff s >= lengths[b] (the module's padding mask)
    wq (H,E), wk (H,H), wv (H,H): nn.Linear weights (PyTorch layout, no bias)
    Returns (1, B, H) float32, matching Attention.forward for 'bahdanau'.

    If this is called inside a decoder loop with fixed weights, hoist the
    W_qk / Wv^T precomputation and the enc_outs re-layout out of the loop.
    """
    tgt_len, B, E = emb.shape
    S, _, H = enc_outs.shape
    assert tgt_len == 1, "module's bahdanau path assumes a single decoder step"

    f32 = jnp.float32

    # Fused query/key projection: q@Wk == emb @ (Wq^T @ Wk);  qk is (B, H).
    w_qk = wq.T.astype(f32) @ wk.astype(f32)                         # (E, H)
    qk = emb[0].astype(f32) @ w_qk                                   # (B, H)

    # Batch-first re-layout so scores/context are batched MXU matmuls and the
    # score tile is lane-dense along S.
    enc_bf = jnp.transpose(enc_outs, (1, 0, 2)).astype(storage_dtype)  # (B, S, H)

    # S tiling: TS multiple of 8 (sublane), S zero-padded to a multiple of TS.
    # Zero-padded positions are fully masked and contribute exactly 0.
    ts = min(block_s, _round_up(S, 8))
    s_pad = _round_up(S, ts)
    if s_pad != S:
        enc_bf = jnp.pad(enc_bf, ((0, 0), (0, s_pad - S), (0, 0)))
    n_s = s_pad // ts
    # VMEM per enc buffer = B*TS*H*itemsize; double-buffered.  With the model's
    # H=512, bf16, TS=128 this is ~128 KiB/batch-row -> far below v7x's 32 MiB
    # scoped default, so no vmem_limit_bytes override is needed.

    len2d = lengths.astype(jnp.int32).reshape(B, 1)
    qk_s = qk.astype(storage_dtype)
    wv_t = wv.T.astype(storage_dtype)                                # (H, H)

    kernel = functools.partial(_attn_tile_kernel, scale=1.0 / math.sqrt(H))

    partial = pl.pallas_call(
        kernel,
        out_shape=jax.ShapeDtypeStruct((n_s, B, H), f32),
        grid=(n_s,),
        in_specs=[
            pl.BlockSpec((B, H), lambda s: (0, 0)),          # qk       (resident)
            pl.BlockSpec((B, ts, H), lambda s: (0, s, 0)),   # enc tile (streamed)
            pl.BlockSpec((B, 1), lambda s: (0, 0)),          # lengths  (resident)
            pl.BlockSpec((H, H), lambda s: (0, 0)),          # Wv^T     (resident)
        ],
        out_specs=pl.BlockSpec((1, B, H), lambda s: (s, 0, 0)),
        compiler_params=pltpu.CompilerParams(
            # Tiles are independent (softmax is per source position over batch),
            # so the S axis can be "parallel" -> v7x's 2nd TensorCore gets work.
            dimension_semantics=("parallel",),
        ),
    )(qk_s, enc_bf, len2d, wv_t)

    out = jnp.sum(partial, axis=0)                           # (B, H), tiny f32 sum
    return out[None, :, :]                                   # (1, B, H)


def reference(emb, enc_outs, mask, wq, wk, wv):
    """Pure-JAX literal transcription of the PyTorch forward (bahdanau + mask)."""
    H = wk.shape[0]
    q = jnp.transpose(emb @ wq.T, (1, 0, 2))             # (B, 1, H)
    k = jnp.transpose(enc_outs @ wk.T, (1, 0, 2))        # (B, S, H)
    e = jnp.einsum('bih,bsh->bis', q, k) / math.sqrt(H)  # (B, 1, S)
    e = jnp.transpose(e[:, 0, :], (1, 0))                # (S, B)
    e = jnp.where(mask, -jnp.inf, e)
    a = jax.nn.softmax(e, axis=-1)                       # softmax over batch axis
    a = jnp.transpose(a, (1, 0))[:, None, :]             # (B, 1, S)
    enc_p = jnp.transpose(enc_outs, (1, 0, 2))           # (B, S, H)
    v = enc_p @ wv.T                                     # (B, S, H)
    w = jnp.einsum('bis,bsh->bih', a, v)                 # (B, 1, H)
    return jnp.transpose(w, (1, 0, 2))                   # (1, B, H)


if __name__ == "__main__":
    # Small but TPU-friendly shapes: H multiple of 128 (model uses 512), S tiled 2x.
    B, S, E, H = 8, 256, 64, 128

    key = jax.random.PRNGKey(0)
    k_emb, k_enc, k_wq, k_wk, k_wv, k_len = jax.random.split(key, 6)

    emb = jax.random.normal(k_emb, (1, B, E), dtype=jnp.float32)
    enc_outs = jax.random.normal(k_enc, (S, B, H), dtype=jnp.float32)

    # PyTorch nn.Linear-style uniform init bounds.
    wq = jax.random.uniform(k_wq, (H, E), jnp.float32,
                            minval=-1.0 / math.sqrt(E), maxval=1.0 / math.sqrt(E))
    wk = jax.random.uniform(k_wk, (H, H), jnp.float32,
                            minval=-1.0 / math.sqrt(H), maxval=1.0 / math.sqrt(H))
    wv = jax.random.uniform(k_wv, (H, H), jnp.float32,
                            minval=-1.0 / math.sqrt(H), maxval=1.0 / math.sqrt(H))

    # Per-batch valid lengths (padding mask).  At least one full-length sequence
    # so no (S, B) softmax row is entirely masked (matches how the model is used).
    lengths = jnp.concatenate([
        jnp.array([S], dtype=jnp.int32),
        jax.random.randint(k_len, (B - 1,), S // 2, S + 1).astype(jnp.int32),
    ])
    mask = jnp.arange(S)[:, None] >= lengths[None, :]    # (S, B) bool, for the ref

    ref = reference(emb, enc_outs, mask, wq, wk, wv)

    # f32 storage: faithful to the PyTorch module's numerics.
    out_f32 = jax.block_until_ready(
        bahdanau_attention(emb, enc_outs, lengths, wq, wk, wv,
                           storage_dtype=jnp.float32))
    assert out_f32.shape == (1, B, H), out_f32.shape
    err32 = jnp.max(jnp.abs(out_f32 - ref))
    assert jnp.allclose(out_f32, ref, atol=1e-3, rtol=1e-3), \
        f"f32 max abs err {err32}"

    # bf16 storage (v6e/v7x recommendation): half the HBM/VMEM traffic, f32
    # accumulation and f32 softmax; checked at a looser tolerance.
    out_bf16 = jax.block_until_ready(
        bahdanau_attention(emb, enc_outs, lengths, wq, wk, wv,
                           storage_dtype=jnp.bfloat16))
    errbf = jnp.max(jnp.abs(out_bf16 - ref))
    assert jnp.allclose(out_bf16, ref, atol=5e-2, rtol=5e-2), \
        f"bf16 max abs err {errbf}"

    print("KERNEL_OK")
</pallas_src>

<mosaic_0001>
module attributes {stable_mosaic.version = 11 : i64} {
  func.func @_attn_tile_kernel(%arg0: i32, %arg1: memref<8x128xf32, #tpu.memory_space<vmem>>, %arg2: memref<8x128x128xf32, #tpu.memory_space<vmem>>, %arg3: memref<8x1xi32, #tpu.memory_space<vmem>>, %arg4: memref<128x128xf32, #tpu.memory_space<vmem>>, %arg5: memref<1x8x128xf32, #tpu.memory_space<vmem>>) attributes {dimension_semantics = [#tpu.dimension_semantics<parallel>], iteration_bounds = array<i64: 2>, scalar_prefetch = 0 : i64, scratch_operands = 0 : i64, tpu.core_type = #tpu.core_type<tc>, window_params = [{pipeline_mode = #tpu.pipeline_mode<synchronous>, transform_indices = @transform_0, window_bounds = array<i64: 8, 128>}, {transform_indices = @transform_1, window_bounds = array<i64: 8, 128, 128>}, {pipeline_mode = #tpu.pipeline_mode<synchronous>, transform_indices = @transform_2, window_bounds = array<i64: 8, 1>}, {pipeline_mode = #tpu.pipeline_mode<synchronous>, transform_indices = @transform_3, window_bounds = array<i64: 128, 128>}, {transform_indices = @transform_4, window_bounds = array<i64: 1, 8, 128>}]} {
    %c0 = arith.constant 0 : index
    %c0_0 = arith.constant 0 : index
    %c0_1 = arith.constant 0 : index
    %0 = vector.load %arg2[%c0, %c0_0, %c0_1] : memref<8x128x128xf32, #tpu.memory_space<vmem>>, vector<8x128x128xf32>
    %c0_2 = arith.constant 0 : index
    %c0_3 = arith.constant 0 : index
    %1 = vector.load %arg1[%c0_2, %c0_3] : memref<8x128xf32, #tpu.memory_space<vmem>>, vector<8x128xf32>
    %2 = vector.shape_cast %1 : vector<8x128xf32> to vector<8x1x128xf32>
    "tpu.trace_start"() <{level = 10 : i32, message = "bqh,bth->bqt"}> : () -> ()
    %cst = arith.constant dense<0.000000e+00> : vector<8x1x128xf32>
    %3 = tpu.matmul %2, %0, %cst {dimension_numbers = #tpu.dot_dimension_numbers<[2], [2], [1], [1], [0, 0, 0, 1, 1, 1], [0], [0]>} : vector<8x1x128xf32>, vector<8x128x128xf32>, vector<8x1x128xf32> -> vector<8x1x128xf32>
    "tpu.trace_stop"() : () -> ()
    %4 = vector.shape_cast %3 : vector<8x1x128xf32> to vector<8x128xf32>
    %cst_4 = arith.constant 0.0883883461 : f32
    %5 = vector.broadcast %cst_4 : f32 to vector<8x128xf32>
    %6 = arith.mulf %4, %5 : vector<8x128xf32>
    %c128_i32 = arith.constant 128 : i32
    %7 = arith.muli %arg0, %c128_i32 : i32
    %8 = tpu.iota {dimensions = array<i32: 1>} : vector<8x128xi32>
    %9 = vector.broadcast %7 : i32 to vector<8x128xi32>
    %10 = arith.addi %9, %8 : vector<8x128xi32>
    %c0_5 = arith.constant 0 : index
    %c0_6 = arith.constant 0 : index
    %11 = vector.load %arg3[%c0_5, %c0_6] : memref<8x1xi32, #tpu.memory_space<vmem>>, vector<8x1xi32>
    %12 = vector.broadcast %11 : vector<8x1xi32> to vector<8x128xi32>
    %13 = arith.cmpi sge, %10, %12 : vector<8x128xi32>
    %cst_7 = arith.constant -1.000000e+30 : f32
    %14 = vector.broadcast %cst_7 : f32 to vector<8x128xf32>
    %15 = arith.select %13, %14, %6 : vector<8x128xi1>, vector<8x128xf32>
    %cst_8 = arith.constant dense<0xFF800000> : vector<128xf32>
    %16 = vector.multi_reduction <maximumf>, %15, %cst_8 [0] : vector<8x128xf32> to vector<128xf32>
    %17 = vector.shape_cast %16 : vector<128xf32> to vector<1x128xf32>
    %18 = vector.broadcast %17 : vector<1x128xf32> to vector<8x128xf32>
    %19 = arith.subf %15, %18 : vector<8x128xf32>
    %20 = math.exp %19 : vector<8x128xf32>
    %cst_9 = arith.constant dense<0.000000e+00> : vector<128xf32>
    %21 = vector.multi_reduction <add>, %20, %cst_9 [0] : vector<8x128xf32> to vector<128xf32>
    %22 = vector.shape_cast %21 : vector<128xf32> to vector<1x128xf32>
    %23 = vector.broadcast %22 : vector<1x128xf32> to vector<8x128xf32>
    %24 = arith.divf %20, %23 : vector<8x128xf32>
    %25 = vector.shape_cast %24 : vector<8x128xf32> to vector<8x1x128xf32>
    "tpu.trace_start"() <{level = 10 : i32, message = "bqt,bth->bqh"}> : () -> ()
    %cst_10 = arith.constant dense<0.000000e+00> : vector<8x1x128xf32>
    %26 = tpu.matmul %25, %0, %cst_10 {dimension_numbers = #tpu.dot_dimension_numbers<[2], [1], [1], [2], [0, 0, 0, 1, 1, 2], [0], [0]>} : vector<8x1x128xf32>, vector<8x128x128xf32>, vector<8x1x128xf32> -> vector<8x1x128xf32>
    "tpu.trace_stop"() : () -> ()
    %27 = vector.shape_cast %26 : vector<8x1x128xf32> to vector<8x128xf32>
    %c0_11 = arith.constant 0 : index
    %c0_12 = arith.constant 0 : index
    %28 = vector.load %arg4[%c0_11, %c0_12] : memref<128x128xf32, #tpu.memory_space<vmem>>, vector<128x128xf32>
    %cst_13 = arith.constant dense<0.000000e+00> : vector<8x128xf32>
    %29 = tpu.matmul %27, %28, %cst_13 {dimension_numbers = #tpu.dot_dimension_numbers<[1], [0], [0], [1], [0, 0, 1, 1], [], []>} : vector<8x128xf32>, vector<128x128xf32>, vector<8x128xf32> -> vector<8x128xf32>
    %c0_14 = arith.constant 0 : index
    %c0_15 = arith.constant 0 : index
    %c0_16 = arith.constant 0 : index
    %30 = vector.load %arg5[%c0_14, %c0_15, %c0_16] : memref<1x8x128xf32, #tpu.memory_space<vmem>>, vector<1x8x128xf32>
    %31 = vector.shape_cast %30 : vector<1x8x128xf32> to vector<8x128xf32>
    %32 = vector.shape_cast %29 : vector<8x128xf32> to vector<1x8x128xf32>
    tpu.vector_store %arg5[%c0_14, %c0_15, %c0_16], %32 {strides = array<i32>} : memref<1x8x128xf32, #tpu.memory_space<vmem>>, vector<1x8x128xf32>,
    return
  }
  func.func @transform_0(%arg0: i32) -> (i32, i32) {
    %c0_i32 = arith.constant 0 : i32
    %c0_i32_0 = arith.constant 0 : i32
    %c0_i32_1 = arith.constant 0 : i32
    return %c0_i32, %c0_i32_0 : i32, i32
  }
  func.func @transform_1(%arg0: i32) -> (i32, i32, i32) {
    %c0_i32 = arith.constant 0 : i32
    %c0_i32_0 = arith.constant 0 : i32
    %c0_i32_1 = arith.constant 0 : i32
    return %c0_i32, %arg0, %c0_i32_0 : i32, i32, i32
  }
  func.func @transform_2(%arg0: i32) -> (i32, i32) {
    %c0_i32 = arith.constant 0 : i32
    %c0_i32_0 = arith.constant 0 : i32
    %c0_i32_1 = arith.constant 0 : i32
    return %c0_i32, %c0_i32_0 : i32, i32
  }
  func.func @transform_3(%arg0: i32) -> (i32, i32) {
    %c0_i32 = arith.constant 0 : i32
    %c0_i32_0 = arith.constant 0 : i32
    %c0_i32_1 = arith.constant 0 : i32
    return %c0_i32, %c0_i32_0 : i32, i32
  }
  func.func @transform_4(%arg0: i32) -> (i32, i32, i32) {
    %c0_i32 = arith.constant 0 : i32
    %c0_i32_0 = arith.constant 0 : i32
    %c0_i32_1 = arith.constant 0 : i32
    return %arg0, %c0_i32, %c0_i32_0 : i32, i32, i32
  }
}

</mosaic_0001>

<bundles_post_ra>
// kernel: tpu_custom_call.1
= control target key start
LH: loop header
LB: loop body
LE: loop exit
PB: predicated region body
PF: predicated region fallthrough
CT: control target
= control target key end

     0   :  { %9 = vsyncpa [#allocation3], 0  ;;  %s4223_s0 = inlined_call_operand.vmem [shape: f32[8,128], index: 0, kind: input, shape index: {}]   ;;  %s4224_s1 = inlined_call_operand.hbm [shape: f32[8,256,128], index: 1, kind: input, shape index: {}]   ;;  %s4225_s2 = inlined_call_operand.vmem [shape: s32[8,1], index: 2, kind: input, shape index: {}]   ;;  %s4226_s3 = inlined_call_operand.hbm [shape: f32[128,128], index: 3, kind: input, shape index: {}]   ;;  %s4227_s4 = inlined_call_operand.hbm [shape: f32[2,8,128], index: 4, kind: output, shape index: {}]  }
   0x1   :  { %11 = vsyncpa [#allocation3 + $0x1], 0 }
   0x2   :  { %12 = vsyncpa [#allocation6], 0 }
   0x3   :  { %13 = vsyncpa [#allocation4], 0 }
   0x4   :  { %15 = vsyncpa [#allocation4 + $0x1], 0  ;;  %s3421_s15 = smov 0   ;;  %s3423_s16 = smov 0  }
   0x5   :  { %s3425_s17 = smov 0   ;;  %s3427_s18 = smov 0  }
   0x6 LB: > { %s3442_s19 = sadd.s32 4294967295, %s3379_s18   ;;  %s1892_s20 = sadd.s32 4294967294, %s3379_s18   ;;  %s3379_s18 = sphi %s3427_s18, %s4290_s18   ;;  %s3375_s17 = sphi %s3425_s17, %s4289_s17   ;;  %s3371_s16 = sphi %s3423_s16, %s4288_s16   ;;  %s3367_s15 = sphi %s3421_s15, %s4287_s15  }
   0x7   : > { %s3446_s21 = sadd.s32 1, %s3379_s18   ;;  %s49_s22 = sadd.s32 1, %s3375_s17 }
   0x8   : > { %s46_s23 = ssub.s32 %s3379_s18, %s3446_s21  ;;  %p56_p0 = scmp.ne.s32.totalorder %s3375_s17, %s3371_s16 }
   0x9   : > { %p47_p1 = scmp.eq.s32.totalorder %s46_s23, 0  ;;  %p57_p2 = scmp.eq.s32.totalorder %s3379_s18, 0 }
   0xa   : > { %p62_p3 = scmp.ne.s32.totalorder %s3371_s16, %s3367_s15  ;;  %p4228_p4 = scmp.eq.s32.totalorder %s3442_s19, 0 }
   0xb   : > { %s3458_s24 = scalar_select %p47_p1, %s3375_s17, %s49_s22  }
   0xc   : > { %p3460_p5 = por %p57_p2, %p56_p0  ;;  %p3466_p6 = por %p4228_p4, %p62_p3 }
   0xd   : > { %p128_p7 = scmp.eq.s32.totalorder %s3442_s19, 1  ;;  %p134_p8 = scmp.eq.s32.totalorder %s1892_s20, 1 }
   0xe   : > { %s4248_s25 = scalar_select %p3460_p5, 1, 0 }
   0xf   : > { %s4249_s26 = scalar_select %p3466_p6, 1, 0 }
  0x10   : > { %p1893_p9 = scmp.ge.s32.totalorder %s3379_s18, 1  ;;  %p141_p10 = scmp.lt.s32.totalorder %s3379_s18, 3 }
  0x11   : > { %p3473_p11 = por %p128_p7, %p56_p0  ;;  %p3477_p12 = por %p134_p8, %p62_p3 }
  0x12   : > { %p3481_p13 = pnand %p1893_p9, %p141_p10  ;;  %s3381_s30 = smov [#allocation5]  }
  0x13   : > { %s4250_s27 = scalar_select %p3473_p11, 1, 0 }
  0x14   : > { %s4251_s28 = scalar_select %p3477_p12, 1, 0 }
  0x15   : > { %s4252_s29 = scalar_select %p3481_p13, 1, 0 }
  0x16   : > { %p3218_p1 = pneg %p3481_p13  ;;  %s159_s5 = sshll.u32 %s3381_s30, 4  ;;  %s160_s5 = int_to_ptr.vmem [resolvable:$true] %s159_s5 }
  0x17   : > { %s3281_s9 = scalar_lea.hbm %s4226_s3, 2048 }
  0x18   : > { %p3489_p2 = pnand %p3218_p1, %p4228_p4  ;;  %p3282_p0 = scmp.ne.s32.totalorder %s4226_s3, %s3281_s9 }
  0x19   : > { %p3288_p9 = scmp.lt.u32.totalorder %s3281_s9, %s4226_s3 }
  0x1a   : > { %p3283_p3 = pneg %p3489_p2 }
  0x1c   : > { %p3284_p7 = pnand %p3283_p3, %p3282_p0 }
  0x1e   : > { %p3285_p8 = pneg %p3284_p7 }
  0x20   : > { %p3290_p10 = pnand %p3288_p9, %p3285_p8 }
  0x22   : > { %3293 = shalt.err (!%p3290_p10)
}
  0x23   : > { %s3294_s14 = scalar_lea.vmem %s160_s5, 2048  ;;  %p3302_p11 = scmp.lt.s32.totalorder %s160_s5, %s160_s5 }
  0x24   : > { %p3295_p1 = scmp.ne.s32.totalorder %s160_s5, %s3294_s14  ;;  %p3303_p6 = scmp.lt.s32.totalorder %s3294_s14, %s3294_s14 }
  0x26   : > { %p3297_p4 = pnand %p3295_p1, %p3283_p3  ;;  %p3304_p13 = por %p3303_p6, %p3302_p11 }
  0x28   : > { %p3298_p12 = pneg %p3297_p4 }
  0x2a   : > { %p3305_p5 = pnand %p3304_p13, %p3298_p12 }
  0x2c   : > { %3308 = shalt.err (!%p3305_p5)
}
  0x2d   : > { %s3382_s20 = smov 128   ;;  %s3383_s22 = smov 8  }
  0x2e   : > { %3221 = dma.hbm_to_vmem [thread:$0]  (!%p3489_p2), %s4226_s3, 2048, %s160_s5, [#allocation6], %s3382_s20, %s3382_s20, %s3383_s22  }
  0x2f   : > { %p1895_p0 = scmp.ge.s32.totalorder %s3379_s18, 2 }
  0x31   : > { %169 = sbr.rel (%p1895_p0) target bundleno = 71 (0x47), region = 28 }
  0x38   : > { %s173_s7 = sand.u32 1, %s3375_s17   ;;  %s1910_s8 = sshll.u32 %s3379_s18, 11 }
  0x39   : > { %s1896_s6 = sshll.u32 %s173_s7, 10  ;;  %s183_s5 = scalar_lea.hbm %s4224_s1, %s1910_s8 }
  0x3a   : > { %p4254_p4 = scmp.ne.s32.totalorder %s4248_s25, 0  ;;  %s177_s12 = scalar_lea.vmem [#allocation2], %s1896_s6 }
  0x3b   : > { %s196_s13 = sshll.u32 %s177_s12, 4  ;;  %s3384_s20 = smov 4096   ;;  %s197_s13 = int_to_ptr.vmem [resolvable:$true] %s196_s13 }
  0x3c   : > { %s3205_s11 = scalar_select %p4254_p4, [#allocation0], [#allocation10] }
  0x3d   : > { %3206 = sst [smem:[#allocation9]] (%p4254_p4), %s3384_s20  ;;  %s3385_s22 = smov 2048  }
  0x3e   : > { %s188_s14 = sld [smem:[%s3205_s11]]   ;;  %s3386_s23 = smov 16  }
  0x3f   : > { %3207 = sst [smem:[#allocation9 + $0x1]] (%p4254_p4), %s3385_s22  ;;  %s3387_s30 = smov 128  }
  0x40   : > { %3208 = sst [smem:[#allocation9 + $0x2]] (%p4254_p4), %s3386_s23  ;;  %s3388_s6 = smov 8  }
  0x41   : > { %3209 = sst [smem:[#allocation9 + $0x3]] (%p4254_p4), %s3387_s30  ;;  %s174_s10 = scalar_lea.sflag [#allocation3], %s173_s7 }
  0x42   : > { %3210 = sst [smem:[#allocation9 + $0x4]] (%p4254_p4), %s3387_s30  ;;  %s3389_s11 = smov [#allocation8]  }
  0x43   : > { %3211 = sst [smem:[#allocation9 + $0x5]] (%p4254_p4), %s3388_s6 }
  0x44   : > { %s1899_s8 = sshll.u32 %s188_s14, 26 }
  0x45   : > { %s1900_s9 = sadd.s32 134217728, %s1899_s8 }
  0x46   : > { %3212 = dma.general (%p4254_p4), %s183_s5, 16384, %s197_s13, %s174_s10, %s3389_s11, [#allocation9], %s1900_s9, 0  }
  0x47 PF: > { %p4255_p5 = scmp.ne.s32.totalorder %s4252_s29, 0 }
  0x49   : > { %221 = sbr.rel (%p4255_p5) target bundleno = 1159 (0x487), region = 36 }
  0x50   : > { %s3536_s12 = sand.u32 1, %s3371_s16   ;;  %p4256_p6 = scmp.ne.s32.totalorder %s4249_s26, 0 }
  0x51   : > { %s1902_s20 = sshll.u32 %s3536_s12, 10  ;;  %s224_s14 = scalar_lea.sflag [#allocation3], %s3536_s12 }
  0x52   : > { %s3540_s22 = scalar_lea.vmem [#allocation2], %s1902_s20 }
  0x53   : > { %3354 = dma.done.wait (%p4256_p6), %s224_s14, 16384  }
  0x54   : > { %3356 = vsyncadd (%p4256_p6), %s224_s14, 4294950912  ;;  %p4257_p11 = scmp.eq.s32.totalorder %s3442_s19, 0 }
  0x56   : > { %3358 = dma.done.wait (%p4257_p11), [#allocation6], 2048   ;;  %p4258_p12 = pmov %p4257_p11 }
  0x57   : > { %v3390_v0 = vmov 0.0|0.0   ;;  %vm3391_vm0 = vmmov 0   ;;  %v4234_v1 = vmov 0.0   ;;  %v257_v2 = vld [vmem:[%s3540_s22] sm:$0xff]  ;;  %v258_v3 = vld [vmem:[%s3540_s22 + $0x8] sm:$0xff]  ;;  %v259_v8 = vld [vmem:[%s3540_s22 + $0x10] sm:$0xff]  ;;  %v4233_v40 = vlaneseq }
  0x58   : > { %3360 = vsyncadd (%p4258_p12), [#allocation6], 4294965248  ;;  %2795 = vmatprep.subr.bf16.mxu0 %v3390_v0  ;;  %2819 = vmatprep.subr.bf16.mxu1 %v3390_v0  ;;  %v273_v4 = vld [vmem:[%s3540_s22 + $0x80] sm:$0xff]  ;;  %v3559_v5 = vpack.c.bf16 %v258_v3, %v257_v2  ;;  %v274_v6 = vld [vmem:[%s3540_s22 + $0x88] sm:$0xff]  ;;  %v3393_v38 = vmov 1966171168  }
  0x59   : > { %2232 = vmatprep.mubr.msk.f32.mxu0 %vm3391_vm0, %v4234_v1  ;;  %2267 = vmatprep.mubr.msk.f32.mxu1 %vm3391_vm0, %v4234_v1  ;;  %v3562_v7 = vpack.c.bf16 %v274_v6, %v273_v4  ;;  %v260_v9 = vld [vmem:[%s3540_s22 + $0x18] sm:$0xff]  ;;  %v275_v10 = vld [vmem:[%s3540_s22 + $0x90] sm:$0xff]  ;;  %v261_v14 = vld [vmem:[%s3540_s22 + $0x20] sm:$0xff]  ;;  %v389_v39 = vunpack.c.l.s4 %v3393_v38  ;;  %v392_v47 = vshrl.u32 %v4233_v40, 7  ;;  %vm1031_vm1 = vcmask 1041409   ;;  %s1905_s5 = sshll.u32 %s3442_s19, 7 }
  0x5a   : > { %2797 = vmatpush3.bf16.xpose.msra.mxu0 %v3559_v5  ;;  %v276_v11 = vld [vmem:[%s3540_s22 + $0x98] sm:$0xff]  ;;  %v3572_v12 = vpack.c.bf16 %v260_v9, %v259_v8  ;;  %v262_v15 = vld [vmem:[%s3540_s22 + $0x28] sm:$0xff]  ;;  %v277_v16 = vld [vmem:[%s3540_s22 + $0xa0] sm:$0xff]  ;;  %vm1034_vm2 = vcmask 1042434   ;;  %vm1037_vm3 = vcmask 1043459   ;;  %vm1040_vm4 = vcmask 1044484   ;;  %s4179_s9 = scalar_lea.hbm %s4227_s4, %s1905_s5 }
  0x5b   : > { %2821 = vmatpush3.bf16.xpose.msra.mxu1 %v3562_v7  ;;  %2798 = vmatprep.subr.bf16.mxu0 %v3390_v0  ;;  %v3574_v13 = vpack.c.bf16 %v276_v11, %v275_v10  ;;  %v278_v17 = vld [vmem:[%s3540_s22 + $0xa8] sm:$0xff]  ;;  %v3584_v18 = vpack.c.bf16 %v262_v15, %v261_v14  ;;  %v263_v20 = vld [vmem:[%s3540_s22 + $0x30] sm:$0xff]  ;;  %v264_v21 = vld [vmem:[%s3540_s22 + $0x38] sm:$0xff]  ;;  %v390_v46 = vunpack.c.0.s8 %v389_v39  ;;  %vm1043_vm5 = vcmask 1045509   ;;  %s1904_s13 = sshll.u32 %s3536_s12, 3  ;;  %s1799_s10 = scalar_lea.sflag [#allocation4], %s3536_s12 }
  0x5c   : > { %2822 = vmatprep.subr.bf16.mxu1 %v3390_v0  ;;  %v3586_v19 = vpack.c.bf16 %v278_v17, %v277_v16  ;;  %v279_v22 = vld [vmem:[%s3540_s22 + $0xb0] sm:$0xff]  ;;  %v280_v23 = vld [vmem:[%s3540_s22 + $0xb8] sm:$0xff]  ;;  %v3596_v24 = vpack.c.bf16 %v264_v21, %v263_v20  ;;  %v265_v26 = vld [vmem:[%s3540_s22 + $0x40] sm:$0xff]  ;;  %vm1046_vm6 = vcmask 1046534   ;;  %vm1049_vm7 = vcmask 1047559   ;;  %s255_s23 = scalar_lea.vmem [#allocation7], %s1904_s13 }
  0x5d   : > { %v3598_v25 = vpack.c.bf16 %v280_v23, %v279_v22  ;;  %v266_v27 = vld [vmem:[%s3540_s22 + $0x48] sm:$0xff]  ;;  %v281_v28 = vld [vmem:[%s3540_s22 + $0xc0] sm:$0xff]  ;;  %v267_v32 = vld [vmem:[%s3540_s22 + $0x50] sm:$0xff]  ;;  %v3638_v49 = vsub.s32 %v390_v46, %v392_v47  ;;  %s1812_s30 = sshll.u32 %s255_s23, 4  ;;  %p4285_p2 = scmp.ne.s32.totalorder %s4250_s27, 0  ;;  %s4181_s30 = int_to_ptr.vmem [resolvable:$true] %s1812_s30 }
  0x5e   : > { %v282_v29 = vld [vmem:[%s3540_s22 + $0xc8] sm:$0xff]  ;;  %v3608_v30 = vpack.c.bf16 %v266_v27, %v265_v26  ;;  %v268_v33 = vld [vmem:[%s3540_s22 + $0x58] sm:$0xff]  ;;  %v283_v34 = vld [vmem:[%s3540_s22 + $0xd0] sm:$0xff]  ;;  %s3309_s11 = scalar_lea.vmem %s4181_s30, 128  ;;  %s3395_s19 = smov [#allocation7]  }
  0x5f   : > { %v3610_v31 = vpack.c.bf16 %v282_v29, %v281_v28  ;;  %v284_v35 = vld [vmem:[%s3540_s22 + $0xd8] sm:$0xff]  ;;  %v3620_v36 = vpack.c.bf16 %v268_v33, %v267_v32  ;;  %v269_v41 = vld [vmem:[%s3540_s22 + $0x60] sm:$0xff]  ;;  %v270_v42 = vld [vmem:[%s3540_s22 + $0x68] sm:$0xff]  ;;  %p3310_p13 = scmp.ne.s32.totalorder %s4181_s30, %s3309_s11  ;;  %s3313_s20 = sshll.u32 %s3395_s19, 4  ;;  %s3314_s20 = int_to_ptr.vmem [resolvable:$false] %s3313_s20 }
  0x60   : > { %v3622_v37 = vpack.c.bf16 %v284_v35, %v283_v34  ;;  %v285_v43 = vld [vmem:[%s3540_s22 + $0xe0] sm:$0xff]  ;;  %v286_v44 = vld [vmem:[%s3540_s22 + $0xe8] sm:$0xff]  ;;  %v3632_v45 = vpack.c.bf16 %v270_v42, %v269_v41  ;;  %v271_v50 = vld [vmem:[%s3540_s22 + $0x70] sm:$0xff]  ;;  %s3315_s14 = scalar_lea.vmem %s3314_s20, 256  ;;  %p3316_p8 = scmp.lt.s32.totalorder %s4181_s30, %s3314_s20 }
  0x61   : > { %v3635_v48 = vpack.c.bf16 %v286_v44, %v285_v43  ;;  %v272_v51 = vld [vmem:[%s3540_s22 + $0x78] sm:$0xff]  ;;  %v3647_v52 = vld [vmem:[%s4223_s0] sm:$0xff]  ;;  %v287_v53 = vld [vmem:[%s3540_s22 + $0xf0] sm:$0xff]  ;;  %p3311_p3 = pnand %p3310_p13, %p4285_p2  ;;  %p3317_p9 = scmp.lt.s32.totalorder %s3315_s14, %s3309_s11 }
  0x62   : > { %2800 = vmatpush3.bf16.xpose.msra.mxu0 %v3572_v12  ;;  %v288_v54 = vld [vmem:[%s3540_s22 + $0xf8] sm:$0xff]  ;;  %v3652_v55 = vpack.c.bf16 %v272_v51, %v271_v50  ;;  %v394_v56 = vrot.slane %v3647_v52, %v3638_v49  ;;  %v289_v59 = vld [vmem:[%s3540_s22 + $0x100] sm:$0xff]  ;;  %v290_v60 = vld [vmem:[%s3540_s22 + $0x108] sm:$0xff] }
  0x63   : > { %2824 = vmatpush3.bf16.xpose.msra.mxu1 %v3574_v13  ;;  %2801 = vmatprep.subr.bf16.mxu0 %v3390_v0  ;;  %v3656_v57 = vpack.c.bf16 %v288_v54, %v287_v53  ;;  %v305_v61 = vld [vmem:[%s3540_s22 + $0x180] sm:$0xff]  ;;  %v306_v62 = vld [vmem:[%s3540_s22 + $0x188] sm:$0xff]  ;;  %v3672_v3 = vpack.c.bf16 %v290_v60, %v289_v59  ;;  %v291_v6 = vld [vmem:[%s3540_s22 + $0x110] sm:$0xff]  ;;  %p3312_p7 = pneg %p3311_p3  ;;  %p3318_p10 = por %p3317_p9, %p3316_p8 }
  0x64   : > { %2825 = vmatprep.subr.bf16.mxu1 %v3390_v0  ;;  %v402_v58 = vcombine.high %v394_v56, %v394_v56  ;;  %v3667_v63 = vrot.slane %v394_v56, %v3638_v49  ;;  %v3674_v4 = vpack.c.bf16 %v306_v62, %v305_v61  ;;  %v292_v8 = vld [vmem:[%s3540_s22 + $0x118] sm:$0xff]  ;;  %v307_v9 = vld [vmem:[%s3540_s22 + $0x190] sm:$0xff]  ;;  %v293_v15 = vld [vmem:[%s3540_s22 + $0x120] sm:$0xff] }
  0x65   : > { %v308_v10 = vld [vmem:[%s3540_s22 + $0x198] sm:$0xff]  ;;  %v3690_v11 = vpack.c.bf16 %v292_v8, %v291_v6  ;;  %v294_v16 = vld [vmem:[%s3540_s22 + $0x128] sm:$0xff]  ;;  %v309_v17 = vld [vmem:[%s3540_s22 + $0x1a0] sm:$0xff]  ;;  %p3319_p1 = pnand %p3318_p10, %p3312_p7 }
  0x66   : > { %v3670_v2 = vrot.slane %v402_v58, %v3638_v49  ;;  %v3692_v14 = vpack.c.bf16 %v308_v10, %v307_v9  ;;  %v310_v20 = vld [vmem:[%s3540_s22 + $0x1a8] sm:$0xff]  ;;  %v3702_v21 = vpack.c.bf16 %v294_v16, %v293_v15  ;;  %v295_v23 = vld [vmem:[%s3540_s22 + $0x130] sm:$0xff]  ;;  %v296_v26 = vld [vmem:[%s3540_s22 + $0x138] sm:$0xff] }
  0x67   : > { %v3704_v22 = vpack.c.bf16 %v310_v20, %v309_v17  ;;  %v311_v27 = vld [vmem:[%s3540_s22 + $0x1b0] sm:$0xff]  ;;  %v312_v28 = vld [vmem:[%s3540_s22 + $0x1b8] sm:$0xff]  ;;  %v3714_v29 = vpack.c.bf16 %v296_v26, %v295_v23  ;;  %v297_v33 = vld [vmem:[%s3540_s22 + $0x140] sm:$0xff]  ;;  %v432_v20 = vcombine.high %v3667_v63, %v3667_v63 }
  0x68   : > { %v3716_v32 = vpack.c.bf16 %v312_v28, %v311_v27  ;;  %v298_v34 = vld [vmem:[%s3540_s22 + $0x148] sm:$0xff]  ;;  %v313_v35 = vld [vmem:[%s3540_s22 + $0x1c0] sm:$0xff]  ;;  %v299_v42 = vld [vmem:[%s3540_s22 + $0x150] sm:$0xff]  ;;  %v434_v23 = vcombine.high %v3670_v2, %v3670_v2 }
  0x69   : > { %v314_v38 = vld [vmem:[%s3540_s22 + $0x1c8] sm:$0xff]  ;;  %v3726_v39 = vpack.c.bf16 %v298_v34, %v297_v33  ;;  %v300_v43 = vld [vmem:[%s3540_s22 + $0x158] sm:$0xff]  ;;  %v315_v44 = vld [vmem:[%s3540_s22 + $0x1d0] sm:$0xff] }
  0x6a   : > { %2803 = vmatpush3.bf16.xpose.msra.mxu0 %v3584_v18  ;;  %v3728_v41 = vpack.c.bf16 %v314_v38, %v313_v35  ;;  %v316_v46 = vld [vmem:[%s3540_s22 + $0x1d8] sm:$0xff]  ;;  %v3738_v47 = vpack.c.bf16 %v300_v43, %v299_v42  ;;  %v301_v51 = vld [vmem:[%s3540_s22 + $0x160] sm:$0xff]  ;;  %v302_v53 = vld [vmem:[%s3540_s22 + $0x168] sm:$0xff] }
  0x6b   : > { %2827 = vmatpush3.bf16.xpose.msra.mxu1 %v3586_v19  ;;  %2804 = vmatprep.subr.bf16.mxu0 %v3390_v0  ;;  %v3740_v50 = vpack.c.bf16 %v316_v46, %v315_v44  ;;  %v317_v54 = vld [vmem:[%s3540_s22 + $0x1e0] sm:$0xff]  ;;  %v318_v56 = vld [vmem:[%s3540_s22 + $0x1e8] sm:$0xff]  ;;  %v3750_v58 = vpack.c.bf16 %v302_v53, %v301_v51  ;;  %v303_v60 = vld [vmem:[%s3540_s22 + $0x170] sm:$0xff] }
  0x6c   : > { %2828 = vmatprep.subr.bf16.mxu1 %v3390_v0  ;;  %v3752_v59 = vpack.c.bf16 %v318_v56, %v317_v54  ;;  %v304_v61 = vld [vmem:[%s3540_s22 + $0x178] sm:$0xff]  ;;  %v319_v62 = vld [vmem:[%s3540_s22 + $0x1f0] sm:$0xff]  ;;  %v321_v10 = vld [vmem:[%s3540_s22 + $0x200] sm:$0xff] }
  0x6d   : > { %v320_v6 = vld [vmem:[%s3540_s22 + $0x1f8] sm:$0xff]  ;;  %v3762_v8 = vpack.c.bf16 %v304_v61, %v303_v60  ;;  %v322_v15 = vld [vmem:[%s3540_s22 + $0x208] sm:$0xff]  ;;  %v337_v16 = vld [vmem:[%s3540_s22 + $0x280] sm:$0xff] }
  0x6e   : > { %v3764_v9 = vpack.c.bf16 %v320_v6, %v319_v62  ;;  %v338_v17 = vld [vmem:[%s3540_s22 + $0x288] sm:$0xff]  ;;  %v3778_v26 = vpack.c.bf16 %v322_v15, %v321_v10  ;;  %v323_v28 = vld [vmem:[%s3540_s22 + $0x210] sm:$0xff]  ;;  %v340_v33 = vld [vmem:[%s3540_s22 + $0x298] sm:$0xff] }
  0x6f   : > { %v3780_v27 = vpack.c.bf16 %v338_v17, %v337_v16  ;;  %v325_v38 = vld [vmem:[%s3540_s22 + $0x220] sm:$0xff]  ;;  %v326_v42 = vld [vmem:[%s3540_s22 + $0x228] sm:$0xff]  ;;  %v327_v53 = vld [vmem:[%s3540_s22 + $0x230] sm:$0xff] }
  0x70   : > { %v341_v43 = vld [vmem:[%s3540_s22 + $0x2a0] sm:$0xff]  ;;  %v342_v44 = vld [vmem:[%s3540_s22 + $0x2a8] sm:$0xff]  ;;  %v3806_v46 = vpack.c.bf16 %v326_v42, %v325_v38  ;;  %v328_v54 = vld [vmem:[%s3540_s22 + $0x238] sm:$0xff] }
  0x71   : > { %v3808_v51 = vpack.c.bf16 %v342_v44, %v341_v43  ;;  %v343_v56 = vld [vmem:[%s3540_s22 + $0x2b0] sm:$0xff]  ;;  %v344_v60 = vld [vmem:[%s3540_s22 + $0x2b8] sm:$0xff]  ;;  %v3818_v61 = vpack.c.bf16 %v328_v54, %v327_v53  ;;  %v329_v6 = vld [vmem:[%s3540_s22 + $0x240] sm:$0xff] }
  0x72   : > { %2806 = vmatpush3.bf16.xpose.msra.mxu0 %v3596_v24  ;;  %v3820_v62 = vpack.c.bf16 %v344_v60, %v343_v56  ;;  %v330_v10 = vld [vmem:[%s3540_s22 + $0x248] sm:$0xff]  ;;  %v345_v15 = vld [vmem:[%s3540_s22 + $0x2c0] sm:$0xff]  ;;  %v387_v60 = vcombine.high %v3647_v52, %v3647_v52 }
  0x73   : > { %2830 = vmatpush3.bf16.xpose.msra.mxu1 %v3598_v25  ;;  %2807 = vmatprep.subr.bf16.mxu0 %v3390_v0  ;;  %v346_v16 = vld [vmem:[%s3540_s22 + $0x2c8] sm:$0xff]  ;;  %v3830_v17 = vpack.c.bf16 %v330_v10, %v329_v6  ;;  %v333_v42 = vld [vmem:[%s3540_s22 + $0x260] sm:$0xff]  ;;  %v335_v6 = vld [vmem:[%s3540_s22 + $0x270] sm:$0xff] }
  0x74   : > { %2831 = vmatprep.subr.bf16.mxu1 %v3390_v0  ;;  %v334_v43 = vld [vmem:[%s3540_s22 + $0x268] sm:$0xff]  ;;  %v349_v44 = vld [vmem:[%s3540_s22 + $0x2e0] sm:$0xff]  ;;  %v336_v10 = vld [vmem:[%s3540_s22 + $0x278] sm:$0xff]  ;;  %v401_v52 = vrot.slane %v387_v60, %v3638_v49 }
  0x75   : > { %v350_v53 = vld [vmem:[%s3540_s22 + $0x2e8] sm:$0xff]  ;;  %v3854_v54 = vpack.c.bf16 %v334_v43, %v333_v42  ;;  %v369_v43 = vld [vmem:[%s3540_s22 + $0x380] sm:$0xff] }
  0x76   : > { %v3856_v56 = vpack.c.bf16 %v350_v53, %v349_v44  ;;  %v354_v42 = vld [vmem:[%s3540_s22 + $0x308] sm:$0xff]  ;;  %v3882_v53 = vrot.slane %v401_v52, %v3638_v49  ;;  %v373_v40 = vld [vmem:[%s3540_s22 + $0x3a0] sm:$0xff] }
  0x77   : > { %v370_v44 = vld [vmem:[%s3540_s22 + $0x388] sm:$0xff] }
  0x7a   : > { %2809 = vmatpush3.bf16.xpose.msra.mxu0 %v3608_v30 }
  0x7b   : > { %2833 = vmatpush3.bf16.xpose.msra.mxu1 %v3610_v31  ;;  %2810 = vmatprep.subr.bf16.mxu0 %v3390_v0 }
  0x7c   : > { %2834 = vmatprep.subr.bf16.mxu1 %v3390_v0 }
  0x82   : > { %2812 = vmatpush3.bf16.xpose.msra.mxu0 %v3620_v36 }
  0x83   : > { %2836 = vmatpush3.bf16.xpose.msra.mxu1 %v3622_v37  ;;  %2813 = vmatprep.subr.bf16.mxu0 %v3390_v0 }
  0x84   : > { %2837 = vmatprep.subr.bf16.mxu1 %v3390_v0 }
  0x8a   : > { %2815 = vmatpush3.bf16.xpose.msra.mxu0 %v3632_v45 }
  0x8b   : > { %2839 = vmatpush3.bf16.xpose.msra.mxu1 %v3635_v48  ;;  %2816 = vmatprep.subr.bf16.mxu0 %v3390_v0 }
  0x8c   : > { %2840 = vmatprep.subr.bf16.mxu1 %v3390_v0 }
  0x92   : > { %2818 = vmatpush3.bf16.xpose.msra.mxu0 %v3652_v55 }
  0x93   : > { %2842 = vmatpush3.bf16.xpose.msra.mxu1 %v3656_v57  ;;  %2843 = vmatprep.subr.bf16.mxu0 %v3390_v0 }
  0x94   : > { %2867 = vmatprep.subr.bf16.mxu1 %v3390_v0 }
  0x99   : > { %2233 = vmatmul.mubr.f32.vlgmr.msra.gmra.mrb[0].mxu0 %v3667_v63  ;;  %v324_v63 = vld [vmem:[%s3540_s22 + $0x218] sm:$0xff] }
  0x9a   : > { %2268 = vmatmul.mubr.f32.vlgmr.msra.gmra.mrb[0].mxu1 %v3670_v2  ;;  %2845 = vmatpush3.bf16.xpose.msra.mxu0 %v3672_v3  ;;  %v339_v2 = vld [vmem:[%s3540_s22 + $0x290] sm:$0xff]  ;;  %v3794_v34 = vpack.c.bf16 %v324_v63, %v323_v28  ;;  %v332_v28 = vld [vmem:[%s3540_s22 + $0x258] sm:$0xff] }
  0x9b   : > { %2869 = vmatpush3.bf16.xpose.msra.mxu1 %v3674_v4  ;;  %2846 = vmatprep.subr.bf16.mxu0 %v3390_v0  ;;  %v3796_v35 = vpack.c.bf16 %v340_v33, %v339_v2  ;;  %v347_v63 = vld [vmem:[%s3540_s22 + $0x2d0] sm:$0xff]  ;;  %v348_v2 = vld [vmem:[%s3540_s22 + $0x2d8] sm:$0xff] }
  0x9c   : > { %2870 = vmatprep.subr.bf16.mxu1 %v3390_v0  ;;  %2302 = vmatprep.mubr.msk.f32.mxu0 %vm3391_vm0, %v4234_v1  ;;  %v3844_v38 = vpack.c.bf16 %v348_v2, %v347_v63  ;;  %v403_v63 = vcombine.high %v401_v52, %v401_v52  ;;  %v353_v2 = vld [vmem:[%s3540_s22 + $0x300] sm:$0xff]  ;;  %v371_v52 = vld [vmem:[%s3540_s22 + $0x390] sm:$0xff] }
  0x9d   : > { %2337 = vmatprep.mubr.msk.f32.mxu1 %vm3391_vm0, %v4234_v1 }
  0x9e   : > { %v3885_v60 = vrot.slane %v403_v63, %v3638_v49  ;;  %v372_v63 = vld [vmem:[%s3540_s22 + $0x398] sm:$0xff] }
  0xa2   : > { %2848 = vmatpush3.bf16.xpose.msra.mxu0 %v3690_v11 }
  0xa3   : > { %2872 = vmatpush3.bf16.xpose.msra.mxu1 %v3692_v14  ;;  %2849 = vmatprep.subr.bf16.mxu0 %v3390_v0 }
  0xa4   : > { %2873 = vmatprep.subr.bf16.mxu1 %v3390_v0 }
  0xaa   : > { %2851 = vmatpush3.bf16.xpose.msra.mxu0 %v3702_v21 }
  0xab   : > { %2875 = vmatpush3.bf16.xpose.msra.mxu1 %v3704_v22  ;;  %2852 = vmatprep.subr.bf16.mxu0 %v3390_v0 }
  0xac   : > { %2876 = vmatprep.subr.bf16.mxu1 %v3390_v0 }
  0xb2   : > { %2854 = vmatpush3.bf16.xpose.msra.mxu0 %v3714_v29 }
  0xb3   : > { %2878 = vmatpush3.bf16.xpose.msra.mxu1 %v3716_v32  ;;  %2855 = vmatprep.subr.bf16.mxu0 %v3390_v0 }
  0xb4   : > { %2879 = vmatprep.subr.bf16.mxu1 %v3390_v0 }
  0xba   : > { %2857 = vmatpush3.bf16.xpose.msra.mxu0 %v3726_v39 }
  0xbb   : > { %2881 = vmatpush3.bf16.xpose.msra.mxu1 %v3728_v41  ;;  %2858 = vmatprep.subr.bf16.mxu0 %v3390_v0 }
  0xbc   : > { %2882 = vmatprep.subr.bf16.mxu1 %v3390_v0 }
  0xc2   : > { %2860 = vmatpush3.bf16.xpose.msra.mxu0 %v3738_v47 }
  0xc3   : > { %2884 = vmatpush3.bf16.xpose.msra.mxu1 %v3740_v50  ;;  %2861 = vmatprep.subr.bf16.mxu0 %v3390_v0 }
  0xc4   : > { %2885 = vmatprep.subr.bf16.mxu1 %v3390_v0 }
  0xca   : > { %2863 = vmatpush3.bf16.xpose.msra.mxu0 %v3750_v58 }
  0xcb   : > { %2887 = vmatpush3.bf16.xpose.msra.mxu1 %v3752_v59  ;;  %2864 = vmatprep.subr.bf16.mxu0 %v3390_v0 }
  0xcc   : > { %2888 = vmatprep.subr.bf16.mxu1 %v3390_v0 }
  0xd2   : > { %2866 = vmatpush3.bf16.xpose.msra.mxu0 %v3762_v8 }
  0xd3   : > { %2890 = vmatpush3.bf16.xpose.msra.mxu1 %v3764_v9  ;;  %2891 = vmatprep.subr.bf16.mxu0 %v3390_v0 }
  0xd4   : > { %2915 = vmatprep.subr.bf16.mxu1 %v3390_v0 }
  0xd9   : > { %2303 = vmatmul.mubr.f32.vlgmr.msra.gmra.mrb[2].mxu0 %v432_v20  ;;  %v3832_v20 = vpack.c.bf16 %v346_v16, %v345_v15  ;;  %v351_v15 = vld [vmem:[%s3540_s22 + $0x2f0] sm:$0xff]  ;;  %v352_v16 = vld [vmem:[%s3540_s22 + $0x2f8] sm:$0xff] }
  0xda   : > { %2338 = vmatmul.mubr.f32.vlgmr.msra.gmra.mrb[2].mxu1 %v434_v23  ;;  %2893 = vmatpush3.bf16.xpose.msra.mxu0 %v3778_v26  ;;  %v331_v23 = vld [vmem:[%s3540_s22 + $0x250] sm:$0xff] }
  0xdb   : > { %2917 = vmatpush3.bf16.xpose.msra.mxu1 %v3780_v27  ;;  %2894 = vmatprep.subr.bf16.mxu0 %v3390_v0  ;;  %v3842_v33 = vpack.c.bf16 %v332_v28, %v331_v23  ;;  %v3868_v23 = vpack.c.bf16 %v336_v10, %v335_v6  ;;  %v3871_v28 = vpack.c.bf16 %v352_v16, %v351_v15  ;;  %v355_v15 = vld [vmem:[%s3540_s22 + $0x310] sm:$0xff]  ;;  %v356_v16 = vld [vmem:[%s3540_s22 + $0x318] sm:$0xff] }
  0xdc   : > { %2918 = vmatprep.subr.bf16.mxu1 %v3390_v0  ;;  %2372 = vmatprep.mubr.msk.f32.mxu0 %vm3391_vm0, %v4234_v1  ;;  %v3887_v6 = vpack.c.bf16 %v354_v42, %v353_v2  ;;  %v3889_v10 = vpack.c.bf16 %v370_v44, %v369_v43  ;;  %v3905_v2 = vpack.c.bf16 %v356_v16, %v355_v15  ;;  %v357_v43 = vld [vmem:[%s3540_s22 + $0x320] sm:$0xff]  ;;  %v358_v44 = vld [vmem:[%s3540_s22 + $0x328] sm:$0xff]  ;;  %v359_v16 = vld [vmem:[%s3540_s22 + $0x330] sm:$0xff] }
  0xdd   : > { %2407 = vmatprep.mubr.msk.f32.mxu1 %vm3391_vm0, %v4234_v1  ;;  %v3907_v42 = vpack.c.bf16 %v372_v63, %v371_v52  ;;  %v360_v52 = vld [vmem:[%s3540_s22 + $0x338] sm:$0xff]  ;;  %v375_v63 = vld [vmem:[%s3540_s22 + $0x3b0] sm:$0xff] }
  0xde   : > { %4259 = vst [vmem:[#allocation14_spill] sm:$0xff] %v3887_v6  ;;  %4260 = vst [vmem:[#allocation15_spill] sm:$0xff] %v3889_v10 }
  0xdf   : > { %4261 = vst [vmem:[#allocation16_spill] sm:$0xff] %v3905_v2  ;;  %4262 = vst [vmem:[#allocation17_spill] sm:$0xff] %v3907_v42 }
  0xe2   : > { %2896 = vmatpush3.bf16.xpose.msra.mxu0 %v3794_v34 }
  0xe3   : > { %2920 = vmatpush3.bf16.xpose.msra.mxu1 %v3796_v35  ;;  %2897 = vmatprep.subr.bf16.mxu0 %v3390_v0 }
  0xe4   : > { %2921 = vmatprep.subr.bf16.mxu1 %v3390_v0 }
  0xea   : > { %2899 = vmatpush3.bf16.xpose.msra.mxu0 %v3806_v46 }
  0xeb   : > { %2923 = vmatpush3.bf16.xpose.msra.mxu1 %v3808_v51  ;;  %2900 = vmatprep.subr.bf16.mxu0 %v3390_v0 }
  0xec   : > { %2924 = vmatprep.subr.bf16.mxu1 %v3390_v0 }
  0xf2   : > { %2902 = vmatpush3.bf16.xpose.msra.mxu0 %v3818_v61 }
  0xf3   : > { %2926 = vmatpush3.bf16.xpose.msra.mxu1 %v3820_v62  ;;  %2903 = vmatprep.subr.bf16.mxu0 %v3390_v0 }
  0xf4   : > { %2927 = vmatprep.subr.bf16.mxu1 %v3390_v0 }
  0xfa   : > { %2905 = vmatpush3.bf16.xpose.msra.mxu0 %v3830_v17 }
  0xfb   : > { %2929 = vmatpush3.bf16.xpose.msra.mxu1 %v3832_v20  ;;  %2906 = vmatprep.subr.bf16.mxu0 %v3390_v0 }
  0xfc   : > { %2930 = vmatprep.subr.bf16.mxu1 %v3390_v0 }
 0x102   : > { %2908 = vmatpush3.bf16.xpose.msra.mxu0 %v3842_v33 }
 0x103   : > { %2932 = vmatpush3.bf16.xpose.msra.mxu1 %v3844_v38  ;;  %2909 = vmatprep.subr.bf16.mxu0 %v3390_v0 }
 0x104   : > { %2933 = vmatprep.subr.bf16.mxu1 %v3390_v0 }
 0x10a   : > { %2911 = vmatpush3.bf16.xpose.msra.mxu0 %v3854_v54 }
 0x10b   : > { %2935 = vmatpush3.bf16.xpose.msra.mxu1 %v3856_v56  ;;  %2912 = vmatprep.subr.bf16.mxu0 %v3390_v0 }
 0x10c   : > { %2936 = vmatprep.subr.bf16.mxu1 %v3390_v0 }
 0x112   : > { %2914 = vmatpush3.bf16.xpose.msra.mxu0 %v3868_v23 }
 0x113   : > { %2938 = vmatpush3.bf16.xpose.msra.mxu1 %v3871_v28  ;;  %2939 = vmatprep.subr.bf16.mxu0 %v3390_v0 }
 0x114   : > { %2963 = vmatprep.subr.bf16.mxu1 %v3390_v0 }
 0x119   : > { %2373 = vmatmul.mubr.f32.vlgmr.msra.gmra.mrb[4].mxu0 %v3882_v53 }
 0x11a   : > { %2408 = vmatmul.mubr.f32.vlgmr.msra.gmra.mrb[4].mxu1 %v3885_v60  ;;  %2941 = vmatpush3.bf16.xpose.msra.mxu0 %v3887_v6 }
 0x11b   : > { %2965 = vmatpush3.bf16.xpose.msra.mxu1 %v3889_v10  ;;  %2942 = vmatprep.subr.bf16.mxu0 %v3390_v0  ;;  %v3917_v10 = vpack.c.bf16 %v358_v44, %v357_v43  ;;  %v3929_v43 = vpack.c.bf16 %v360_v52, %v359_v16  ;;  %v1017_v44 = vld [vmem:[%s4225_s2] sm:$0xff]  ;;  %v362_v52 = vld [vmem:[%s3540_s22 + $0x348] sm:$0xff] }
 0x11c   : > { %2966 = vmatprep.subr.bf16.mxu1 %v3390_v0  ;;  %2442 = vmatprep.mubr.msk.f32.mxu0 %vm3391_vm0, %v4234_v1  ;;  %v361_v16 = vld [vmem:[%s3540_s22 + $0x340] sm:$0xff] }
 0x11d   : > { %2477 = vmatprep.mubr.msk.f32.mxu1 %vm3391_vm0, %v4234_v1  ;;  %v374_v1 = vld [vmem:[%s3540_s22 + $0x3a8] sm:$0xff]  ;;  %4263 = vst [vmem:[#allocation18_spill] sm:$0xff] %v3917_v10  ;;  %4265 = vst [vmem:[#allocation20_spill] sm:$0xff] %v3929_v43 }
 0x11e   : > { %v3919_v15 = vpack.c.bf16 %v374_v1, %v373_v40  ;;  %v3394_v40 = vmov 0  }
 0x11f   : > { %3275 = vset.pattern.permute.xlu0 %v3394_v40  ;;  %v3944_v40 = vpack.c.bf16 %v362_v52, %v361_v16 }
 0x120   : > { %4264 = vst [vmem:[#allocation19_spill] sm:$0xff] %v3919_v15  ;;  %1019 = vperm.xlu0 %3275, %v1017_v44   ;;  %v380_v44 = vld [vmem:[%s3540_s22 + $0x3d8] sm:$0xff] }
 0x121   : > { %4267 = vst [vmem:[#allocation22_spill] sm:$0xff] %v3944_v40 }
 0x122   : > { %2944 = vmatpush3.bf16.xpose.msra.mxu0 %v3905_v2 }
 0x123   : > { %2968 = vmatpush3.bf16.xpose.msra.mxu1 %v3907_v42  ;;  %2945 = vmatprep.subr.bf16.mxu0 %v3390_v0  ;;  %v376_v42 = vld [vmem:[%s3540_s22 + $0x3b8] sm:$0xff] }
 0x124   : > { %2969 = vmatprep.subr.bf16.mxu1 %v3390_v0  ;;  %v3931_v1 = vpack.c.bf16 %v376_v42, %v375_v63  ;;  %v377_v42 = vld [vmem:[%s3540_s22 + $0x3c0] sm:$0xff]  ;;  %v378_v63 = vld [vmem:[%s3540_s22 + $0x3c8] sm:$0xff] }
 0x126   : > { %4266 = vst [vmem:[#allocation21_spill] sm:$0xff] %v3931_v1 }
 0x12a   : > { %2947 = vmatpush3.bf16.xpose.msra.mxu0 %v3917_v10  ;;  %v379_v10 = vld [vmem:[%s3540_s22 + $0x3d0] sm:$0xff] }
 0x12b   : > { %2971 = vmatpush3.bf16.xpose.msra.mxu1 %v3919_v15  ;;  %2948 = vmatprep.subr.bf16.mxu0 %v3390_v0  ;;  %v364_v15 = vld [vmem:[%s3540_s22 + $0x358] sm:$0xff]  ;;  %v3958_v52 = vpack.c.bf16 %v380_v44, %v379_v10  ;;  %v367_v10 = vld [vmem:[%s3540_s22 + $0x370] sm:$0xff] }
 0x12c   : > { %2972 = vmatprep.subr.bf16.mxu1 %v3390_v0  ;;  %v383_v44 = vld [vmem:[%s3540_s22 + $0x3f0] sm:$0xff] }
 0x12d   : > { %4270 = vst [vmem:[#allocation25_spill] sm:$0xff] %v3958_v52 }
 0x132   : > { %2950 = vmatpush3.bf16.xpose.msra.mxu0 %v3929_v43  ;;  %v3946_v43 = vpack.c.bf16 %v378_v63, %v377_v42  ;;  %v365_v42 = vld [vmem:[%s3540_s22 + $0x360] sm:$0xff]  ;;  %v366_v63 = vld [vmem:[%s3540_s22 + $0x368] sm:$0xff] }
 0x133   : > { %2974 = vmatpush3.bf16.xpose.msra.mxu1 %v3931_v1  ;;  %2951 = vmatprep.subr.bf16.mxu0 %v3390_v0  ;;  %v363_v1 = vld [vmem:[%s3540_s22 + $0x350] sm:$0xff]  ;;  %v3968_v2 = vpack.c.bf16 %v366_v63, %v365_v42 }
 0x134   : > { %2975 = vmatprep.subr.bf16.mxu1 %v3390_v0  ;;  %4268 = vst [vmem:[#allocation23_spill] sm:$0xff] %v3946_v43  ;;  %v3956_v16 = vpack.c.bf16 %v364_v15, %v363_v1  ;;  %v368_v1 = vld [vmem:[%s3540_s22 + $0x378] sm:$0xff] }
 0x136   : > { %4269 = vst [vmem:[#allocation24_spill] sm:$0xff] %v3956_v16 }
 0x13a   : > { %2953 = vmatpush3.bf16.xpose.msra.mxu0 %v3944_v40  ;;  %v382_v40 = vld [vmem:[%s3540_s22 + $0x3e8] sm:$0xff] }
 0x13b   : > { %2977 = vmatpush3.bf16.xpose.msra.mxu1 %v3946_v43  ;;  %2954 = vmatprep.subr.bf16.mxu0 %v3390_v0  ;;  %v381_v43 = vld [vmem:[%s3540_s22 + $0x3e0] sm:$0xff] }
 0x13c   : > { %2978 = vmatprep.subr.bf16.mxu1 %v3390_v0  ;;  %v3970_v15 = vpack.c.bf16 %v382_v40, %v381_v43  ;;  %v433_v43 = vcombine.high %v3882_v53, %v3882_v53  ;;  %v435_v40 = vcombine.high %v3885_v60, %v3885_v60 }
 0x142   : > { %2956 = vmatpush3.bf16.xpose.msra.mxu0 %v3956_v16  ;;  %v3980_v16 = vpack.c.bf16 %v368_v1, %v367_v10 }
 0x143   : > { %2980 = vmatpush3.bf16.xpose.msra.mxu1 %v3958_v52  ;;  %2957 = vmatprep.subr.bf16.mxu0 %v3390_v0  ;;  %v384_v52 = vld [vmem:[%s3540_s22 + $0x3f8] sm:$0xff] }
 0x144   : > { %2981 = vmatprep.subr.bf16.mxu1 %v3390_v0  ;;  %v3982_v6 = vpack.c.bf16 %v384_v52, %v383_v44  ;;  %v4271_v52 = vmov 0.0  }
 0x14a   : > { %2959 = vmatpush3.bf16.xpose.msra.mxu0 %v3968_v2 }
 0x14b   : > { %2983 = vmatpush3.bf16.xpose.msra.mxu1 %v3970_v15  ;;  %2960 = vmatprep.subr.bf16.mxu0 %v3390_v0 }
 0x14c   : > { %2984 = vmatprep.subr.bf16.mxu1 %v3390_v0 }
 0x152   : > { %2962 = vmatpush3.bf16.xpose.msra.mxu0 %v3980_v16 }
 0x153   : > { %2986 = vmatpush3.bf16.xpose.msra.mxu1 %v3982_v6  ;;  %2987 = vmatprep.subr.bf16.mxu0 %v3390_v0 }
 0x154   : > { %3011 = vmatprep.subr.bf16.mxu1 %v3390_v0 }
 0x159   : > { %2443 = vmatmul.mubr.f32.vlgmr.msra.gmra.mrb[6].mxu0 %v433_v43 }
 0x15a   : > { %2478 = vmatmul.mubr.f32.vlgmr.msra.gmra.mrb[6].mxu1 %v435_v40  ;;  %2989 = vmatpush3.bf16.msra.mxu0 %v3559_v5 }
 0x15b   : > { %3013 = vmatpush3.bf16.msra.mxu1 %v3562_v7  ;;  %2990 = vmatprep.subr.bf16.mxu0 %v3390_v0 }
 0x15c   : > { %3014 = vmatprep.subr.bf16.mxu1 %v3390_v0  ;;  %2512 = vmatprep.mubr.msk.f32.mxu0 %vm3391_vm0, %v4271_v52 }
 0x15d   : > { %2547 = vmatprep.mubr.msk.f32.mxu1 %vm3391_vm0, %v4271_v52 }
 0x15e   : > { %2992 = vmatpush3.bf16.msra.mxu0 %v3572_v12 }
 0x15f   : > { %3016 = vmatpush3.bf16.msra.mxu1 %v3574_v13  ;;  %2993 = vmatprep.subr.bf16.mxu0 %v3390_v0 }
 0x160   : > { %3017 = vmatprep.subr.bf16.mxu1 %v3390_v0 }
 0x162   : > { %2995 = vmatpush3.bf16.msra.mxu0 %v3584_v18 }
 0x163   : > { %3019 = vmatpush3.bf16.msra.mxu1 %v3586_v19  ;;  %2996 = vmatprep.subr.bf16.mxu0 %v3390_v0 }
 0x164   : > { %3020 = vmatprep.subr.bf16.mxu1 %v3390_v0 }
 0x166   : > { %2998 = vmatpush3.bf16.msra.mxu0 %v3596_v24 }
 0x167   : > { %3022 = vmatpush3.bf16.msra.mxu1 %v3598_v25  ;;  %2999 = vmatprep.subr.bf16.mxu0 %v3390_v0 }
 0x168   : > { %3023 = vmatprep.subr.bf16.mxu1 %v3390_v0 }
 0x16a   : > { %3001 = vmatpush3.bf16.msra.mxu0 %v3608_v30 }
 0x16b   : > { %3025 = vmatpush3.bf16.msra.mxu1 %v3610_v31  ;;  %3002 = vmatprep.subr.bf16.mxu0 %v3390_v0 }
 0x16c   : > { %v510_v5 = vpop.f32.mrb[0].mxu0  ;;  %3026 = vmatprep.subr.bf16.mxu1 %v3390_v0 }
 0x16d   : > { %v580_v7 = vpop.f32.mrb[0].mxu1  ;;  %v2234_v12 = vpop.f32.mrb[1].mxu0  ;;  %v1004_v13 = vmul.f32 0.088388346, %v510_v5 }
 0x16e   : > { %v1005_v18 = vmul.f32 0.088388346, %v580_v7  ;;  %v2269_v19 = vpop.f32.mrb[1].mxu1  ;;  %3004 = vmatpush3.bf16.msra.mxu0 %v3620_v36 }
 0x16f   : > { %3028 = vmatpush3.bf16.msra.mxu1 %v3622_v37  ;;  %3005 = vmatprep.subr.bf16.mxu0 %v3390_v0  ;;  %v1015_v19 = vstv %s1905_s5 }
 0x170   : > { %v1030_v24 = vrot.slane %v1005_v18, 7  ;;  %3029 = vmatprep.subr.bf16.mxu1 %v3390_v0 }
 0x172   : > { %v1032_v25 = vsel %vm1031_vm1, %v1030_v24, %v1004_v13  ;;  %3007 = vmatpush3.bf16.msra.mxu0 %v3632_v45  ;;  %v4272_v13 = vlaneseq }
 0x173   : > { %3031 = vmatpush3.bf16.msra.mxu1 %v3635_v48  ;;  %3008 = vmatprep.subr.bf16.mxu0 %v3390_v0 }
 0x174   : > { %3032 = vmatprep.subr.bf16.mxu1 %v3390_v0  ;;  %v1014_v18 = vand.u32 127, %v4272_v13 }
 0x176   : > { %3010 = vmatpush3.bf16.msra.mxu0 %v3652_v55 }
 0x177   : > { %3034 = vmatpush3.bf16.msra.mxu1 %v3656_v57  ;;  %3035 = vmatprep.subr.bf16.mxu0 %v3390_v0 }
 0x178   : > { %3059 = vmatprep.subr.bf16.mxu1 %v3390_v0 }
 0x1ac   : > { %v650_v30 = vpop.f32.mrb[2].mxu0 }
 0x1ad   : > { %v1006_v31 = vmul.f32 0.088388346, %v650_v30  ;;  %v2304_v36 = vpop.f32.mrb[3].mxu0  ;;  %v720_v37 = vpop.f32.mrb[2].mxu1 }
 0x1ae   : > { %v1007_v45 = vmul.f32 0.088388346, %v720_v37  ;;  %v2339_v53 = vpop.f32.mrb[3].mxu1  ;;  %v1020_v30 = vpop.permute.xlu0 %1019 }
 0x1af   : > { %v1033_v48 = vrot.slane %v1006_v31, 6 }
 0x1b0   : > { %v1036_v60 = vrot.slane %v1007_v45, 5 }
 0x1b1   : > { %v1035_v42 = vsel %vm1034_vm2, %v1033_v48, %v1032_v25  ;;  %v1016_v25 = vadd.s32 %v1015_v19, %v1014_v18 }
 0x1b2   : > { %v1038_v55 = vsel %vm1037_vm3, %v1036_v60, %v1035_v42 }
 0x1b3   : > { %vm1021_vm8 = vcmp.ge.s32.totalorder %v1016_v25, %v1020_v30 }
 0x1ec   : > { %v790_v57 = vpop.f32.mrb[4].mxu0 }
 0x1ed   : > { %v1008_v63 = vmul.f32 0.088388346, %v790_v57  ;;  %v2374_v10 = vpop.f32.mrb[5].mxu0  ;;  %v860_v1 = vpop.f32.mrb[4].mxu1 }
 0x1ee   : > { %v1009_v44 = vmul.f32 0.088388346, %v860_v1  ;;  %v2409_v43 = vpop.f32.mrb[5].mxu1 }
 0x1ef   : > { %v1039_v40 = vrot.slane %v1008_v63, 4 }
 0x1f0   : > { %v1042_v5 = vrot.slane %v1009_v44, 3 }
 0x1f1   : > { %v1041_v7 = vsel %vm1040_vm4, %v1039_v40, %v1038_v55 }
 0x1f2   : > { %v1044_v12 = vsel %vm1043_vm5, %v1042_v5, %v1041_v7 }
 0x22c   : > { %v930_v24 = vpop.f32.mrb[6].mxu0 }
 0x22d   : > { %v1010_v31 = vmul.f32 0.088388346, %v930_v24  ;;  %v1000_v36 = vpop.f32.mrb[6].mxu1  ;;  %v2444_v37 = vpop.f32.mrb[7].mxu0 }
 0x22e   : > { %v1011_v45 = vmul.f32 0.088388346, %v1000_v36  ;;  %v2479_v53 = vpop.f32.mrb[7].mxu1 }
 0x22f   : > { %v1045_v48 = vrot.slane %v1010_v31, 2 }
 0x230   : > { %v1048_v60 = vrot.slane %v1011_v45, 1 }
 0x231   : > { %v1047_v42 = vsel %vm1046_vm6, %v1045_v48, %v1044_v12 }
 0x232   : > { %v1050_v55 = vsel %vm1049_vm7, %v1048_v60, %v1047_v42  ;;  %v1700_v42 = vld [vmem:[#allocation5 + $0x60] sm:$0xff] }
 0x233   : > { %v1052_v57 = vsel %vm1021_vm8, -1e+30, %v1050_v55  ;;  %v1701_v55 = vld [vmem:[#allocation5 + $0x68] sm:$0xff] }
 0x234   : > { %v1053_v63 = vrot.slane %v1052_v57, 4 }
 0x236   : > { %v1054_v10 = vmax.f32 %v1052_v57, %v1053_v63  ;;  %v1702_v63 = vld [vmem:[#allocation5 + $0x70] sm:$0xff] }
 0x238   : > { %v1055_v1 = vrot.slane %v1054_v10, 2 }
 0x23a   : > { %v1056_v44 = vmax.f32 %v1054_v10, %v1055_v1  ;;  %v1703_v10 = vld [vmem:[#allocation5 + $0x78] sm:$0xff] }
 0x23b   : > { %v3201_v1 = vpack.c.bf16 %v1703_v10, %v1702_v63 }
 0x23c   : > { %v1057_v43 = vrot.slane %v1056_v44, 1 }
 0x23e   : > { %v1058_v40 = vmax.f32 %v1056_v44, %v1057_v43 }
 0x240   : > { %v1059_v5 = vsub.f32 %v1052_v57, %v1058_v40  ;;  %v3198_v57 = vpack.c.bf16 %v1701_v55, %v1700_v42 }
 0x242   : > { %v1060_v7 = vmul.f32 1.442695, %v1059_v5 }
 0x244   : > { %3277 = vpow2.f32 %v1060_v7 }
 0x24e   : > { %v3278_v13 = vpop.eup %3277 }
 0x24f   : > { %v1062_v18 = vrot.slane %v3278_v13, 4 }
 0x251   : > { %v1063_v19 = vadd.f32 %v3278_v13, %v1062_v18 }
 0x253   : > { %v1064_v24 = vrot.slane %v1063_v19, 2 }
 0x255   : > { %v1065_v31 = vadd.f32 %v1064_v24, %v1063_v19 }
 0x257   : > { %v1066_v25 = vrot.slane %v1065_v31, 1 }
 0x259   : > { %v1067_v30 = vadd.f32 %v1066_v25, %v1065_v31 }
 0x25b   : > { %3279 = vrcp.f32 %v1067_v30 }
 0x265   : > { %v3280_v12 = vpop.eup %3279 }
 0x266   : > { %v4039_v36 = vmul.f32 %v3280_v12, %v3278_v13 }
 0x268   : > { %v1078_v37 = vrot.slane %v4039_v36, %v3638_v49 }
 0x26a   : > { %v1094_v45 = vrot.slane %v1078_v37, %v3638_v49  ;;  %v1086_v53 = vcombine.high %v1078_v37, %v1078_v37 }
 0x26c   : > { %2513 = vmatmul.mubr.f32.vlgmr.msra.gmra.mrb[8].mxu0 %v1094_v45  ;;  %v1108_v48 = vrot.slane %v1086_v53, %v3638_v49 }
 0x26d   : > { %3037 = vmatpush3.bf16.msra.mxu0 %v3672_v3  ;;  %2582 = vmatprep.mubr.msk.f32.mxu0 %vm3391_vm0, %v4271_v52  ;;  %v1116_v3 = vcombine.high %v1094_v45, %v1094_v45 }
 0x26e   : > { %2548 = vmatmul.mubr.f32.vlgmr.msra.gmra.mrb[8].mxu1 %v1108_v48  ;;  %3038 = vmatprep.subr.bf16.mxu0 %v3390_v0 }
 0x26f   : > { %3061 = vmatpush3.bf16.msra.mxu1 %v3674_v4  ;;  %2617 = vmatprep.mubr.msk.f32.mxu1 %vm3391_vm0, %v4271_v52  ;;  %v1118_v4 = vcombine.high %v1108_v48, %v1108_v48 }
 0x270   : > { %3062 = vmatprep.subr.bf16.mxu1 %v3390_v0 }
 0x271   : > { %3040 = vmatpush3.bf16.msra.mxu0 %v3690_v11  ;;  %v1071_v11 = vcombine.high %v4039_v36, %v4039_v36 }
 0x272   : > { %3041 = vmatprep.subr.bf16.mxu0 %v3390_v0 }
 0x273   : > { %3064 = vmatpush3.bf16.msra.mxu1 %v3692_v14  ;;  %v1085_v14 = vrot.slane %v1071_v11, %v3638_v49 }
 0x274   : > { %3065 = vmatprep.subr.bf16.mxu1 %v3390_v0 }
 0x275   : > { %3043 = vmatpush3.bf16.msra.mxu0 %v3702_v21  ;;  %v1087_v21 = vcombine.high %v1085_v14, %v1085_v14 }
 0x276   : > { %3044 = vmatprep.subr.bf16.mxu0 %v3390_v0 }
 0x277   : > { %3067 = vmatpush3.bf16.msra.mxu1 %v3704_v22  ;;  %v1101_v22 = vrot.slane %v1085_v14, %v3638_v49 }
 0x278   : > { %3068 = vmatprep.subr.bf16.mxu1 %v3390_v0 }
 0x279   : > { %3046 = vmatpush3.bf16.msra.mxu0 %v3714_v29  ;;  %v1115_v29 = vrot.slane %v1087_v21, %v3638_v49  ;;  %v4276_v49 = vld [vmem:[#allocation17_spill] sm:$0xff] }
 0x27a   : > { %3047 = vmatprep.subr.bf16.mxu0 %v3390_v0 }
 0x27b   : > { %3070 = vmatpush3.bf16.msra.mxu1 %v3716_v32  ;;  %v4273_v32 = vld [vmem:[#allocation14_spill] sm:$0xff] }
 0x27c   : > { %3071 = vmatprep.subr.bf16.mxu1 %v3390_v0 }
 0x27d   : > { %3049 = vmatpush3.bf16.msra.mxu0 %v3726_v39  ;;  %v4274_v39 = vld [vmem:[#allocation15_spill] sm:$0xff] }
 0x27e   : > { %3050 = vmatprep.subr.bf16.mxu0 %v3390_v0 }
 0x27f   : > { %3073 = vmatpush3.bf16.msra.mxu1 %v3728_v41  ;;  %v4275_v41 = vld [vmem:[#allocation16_spill] sm:$0xff] }
 0x280   : > { %3074 = vmatprep.subr.bf16.mxu1 %v3390_v0 }
 0x281   : > { %3052 = vmatpush3.bf16.msra.mxu0 %v3738_v47  ;;  %v4277_v47 = vld [vmem:[#allocation18_spill] sm:$0xff] }
 0x282   : > { %3053 = vmatprep.subr.bf16.mxu0 %v3390_v0 }
 0x283   : > { %3076 = vmatpush3.bf16.msra.mxu1 %v3740_v50  ;;  %v4278_v50 = vld [vmem:[#allocation19_spill] sm:$0xff] }
 0x284   : > { %3077 = vmatprep.subr.bf16.mxu1 %v3390_v0 }
 0x285   : > { %3055 = vmatpush3.bf16.msra.mxu0 %v3750_v58  ;;  %v4279_v58 = vld [vmem:[#allocation20_spill] sm:$0xff] }
 0x286   : > { %3056 = vmatprep.subr.bf16.mxu0 %v3390_v0 }
 0x287   : > { %3079 = vmatpush3.bf16.msra.mxu1 %v3752_v59  ;;  %v4280_v59 = vld [vmem:[#allocation21_spill] sm:$0xff] }
 0x288   : > { %3080 = vmatprep.subr.bf16.mxu1 %v3390_v0 }
 0x289   : > { %3058 = vmatpush3.bf16.msra.mxu0 %v3762_v8  ;;  %v4281_v8 = vld [vmem:[#allocation22_spill] sm:$0xff] }
 0x28a   : > { %3083 = vmatprep.subr.bf16.mxu0 %v3390_v0 }
 0x28b   : > { %3082 = vmatpush3.bf16.msra.mxu1 %v3764_v9  ;;  %v4282_v9 = vld [vmem:[#allocation23_spill] sm:$0xff] }
 0x28c   : > { %2583 = vmatmul.mubr.f32.vlgmr.msra.gmra.mrb[10].mxu0 %v1116_v3  ;;  %3107 = vmatprep.subr.bf16.mxu1 %v3390_v0 }
 0x28d   : > { %3085 = vmatpush3.bf16.msra.mxu0 %v3778_v26  ;;  %2652 = vmatprep.mubr.msk.f32.mxu0 %vm3391_vm0, %v4271_v52  ;;  %v4283_v26 = vld [vmem:[#allocation24_spill] sm:$0xff] }
 0x28e   : > { %2618 = vmatmul.mubr.f32.vlgmr.msra.gmra.mrb[10].mxu1 %v1118_v4  ;;  %3086 = vmatprep.subr.bf16.mxu0 %v3390_v0 }
 0x28f   : > { %3109 = vmatpush3.bf16.msra.mxu1 %v3780_v27  ;;  %2687 = vmatprep.mubr.msk.f32.mxu1 %vm3391_vm0, %v4271_v52  ;;  %v4284_v27 = vld [vmem:[#allocation25_spill] sm:$0xff] }
 0x290   : > { %3110 = vmatprep.subr.bf16.mxu1 %v3390_v0 }
 0x291   : > { %3088 = vmatpush3.bf16.msra.mxu0 %v3794_v34  ;;  %v1117_v34 = vcombine.high %v1101_v22, %v1101_v22 }
 0x292   : > { %3089 = vmatprep.subr.bf16.mxu0 %v3390_v0 }
 0x293   : > { %3112 = vmatpush3.bf16.msra.mxu1 %v3796_v35  ;;  %v1119_v35 = vcombine.high %v1115_v29, %v1115_v29 }
 0x294   : > { %3113 = vmatprep.subr.bf16.mxu1 %v3390_v0 }
 0x295   : > { %3091 = vmatpush3.bf16.msra.mxu0 %v3806_v46  ;;  %v1688_v46 = vld [vmem:[#allocation5] sm:$0xff] }
 0x296   : > { %3092 = vmatprep.subr.bf16.mxu0 %v3390_v0 }
 0x297   : > { %3115 = vmatpush3.bf16.msra.mxu1 %v3808_v51  ;;  %v1689_v51 = vld [vmem:[#allocation5 + $0x8] sm:$0xff] }
 0x298   : > { %3116 = vmatprep.subr.bf16.mxu1 %v3390_v0 }
 0x299   : > { %3094 = vmatpush3.bf16.msra.mxu0 %v3818_v61  ;;  %v3180_v61 = vpack.c.bf16 %v1689_v51, %v1688_v46 }
 0x29a   : > { %3095 = vmatprep.subr.bf16.mxu0 %v3390_v0 }
 0x29b   : > { %3118 = vmatpush3.bf16.msra.mxu1 %v3820_v62  ;;  %v1690_v62 = vld [vmem:[#allocation5 + $0x10] sm:$0xff] }
 0x29c   : > { %3119 = vmatprep.subr.bf16.mxu1 %v3390_v0 }
 0x29d   : > { %3097 = vmatpush3.bf16.msra.mxu0 %v3830_v17  ;;  %v1691_v17 = vld [vmem:[#allocation5 + $0x18] sm:$0xff] }
 0x29e   : > { %3098 = vmatprep.subr.bf16.mxu0 %v3390_v0 }
 0x29f   : > { %3121 = vmatpush3.bf16.msra.mxu1 %v3832_v20  ;;  %v3183_v20 = vpack.c.bf16 %v1691_v17, %v1690_v62 }
 0x2a0   : > { %3122 = vmatprep.subr.bf16.mxu1 %v3390_v0 }
 0x2a1   : > { %3100 = vmatpush3.bf16.msra.mxu0 %v3842_v33  ;;  %v1692_v33 = vld [vmem:[#allocation5 + $0x20] sm:$0xff] }
 0x2a2   : > { %3101 = vmatprep.subr.bf16.mxu0 %v3390_v0 }
 0x2a3   : > { %3124 = vmatpush3.bf16.msra.mxu1 %v3844_v38  ;;  %v1693_v38 = vld [vmem:[#allocation5 + $0x28] sm:$0xff] }
 0x2a4   : > { %3125 = vmatprep.subr.bf16.mxu1 %v3390_v0 }
 0x2a5   : > { %3103 = vmatpush3.bf16.msra.mxu0 %v3854_v54  ;;  %v3186_v54 = vpack.c.bf16 %v1693_v38, %v1692_v33 }
 0x2a6   : > { %3104 = vmatprep.subr.bf16.mxu0 %v3390_v0 }
 0x2a7   : > { %3127 = vmatpush3.bf16.msra.mxu1 %v3856_v56  ;;  %v1694_v56 = vld [vmem:[#allocation5 + $0x30] sm:$0xff] }
 0x2a8   : > { %3128 = vmatprep.subr.bf16.mxu1 %v3390_v0 }
 0x2a9   : > { %3106 = vmatpush3.bf16.msra.mxu0 %v3868_v23  ;;  %v1695_v23 = vld [vmem:[#allocation5 + $0x38] sm:$0xff] }
 0x2aa   : > { %3131 = vmatprep.subr.bf16.mxu0 %v3390_v0 }
 0x2ab   : > { %3130 = vmatpush3.bf16.msra.mxu1 %v3871_v28  ;;  %v3189_v28 = vpack.c.bf16 %v1695_v23, %v1694_v56 }
 0x2ac   : > { %2653 = vmatmul.mubr.f32.vlgmr.msra.gmra.mrb[12].mxu0 %v1101_v22  ;;  %3155 = vmatprep.subr.bf16.mxu1 %v3390_v0 }
 0x2ad   : > { %3133 = vmatpush3.bf16.msra.mxu0 %v4273_v32  ;;  %2722 = vmatprep.mubr.msk.f32.mxu0 %vm3391_vm0, %v4271_v52 }
 0x2ae   : > { %2688 = vmatmul.mubr.f32.vlgmr.msra.gmra.mrb[12].mxu1 %v1115_v29  ;;  %3134 = vmatprep.subr.bf16.mxu0 %v3390_v0 }
 0x2af   : > { %3157 = vmatpush3.bf16.msra.mxu1 %v4274_v39  ;;  %2757 = vmatprep.mubr.msk.f32.mxu1 %vm3391_vm0, %v4271_v52 }
 0x2b0   : > { %3158 = vmatprep.subr.bf16.mxu1 %v3390_v0 }
 0x2b1   : > { %3136 = vmatpush3.bf16.msra.mxu0 %v4275_v41 }
 0x2b2   : > { %3137 = vmatprep.subr.bf16.mxu0 %v3390_v0 }
 0x2b3   : > { %3160 = vmatpush3.bf16.msra.mxu1 %v4276_v49 }
 0x2b4   : > { %3161 = vmatprep.subr.bf16.mxu1 %v3390_v0 }
 0x2b5   : > { %3139 = vmatpush3.bf16.msra.mxu0 %v4277_v47 }
 0x2b6   : > { %3140 = vmatprep.subr.bf16.mxu0 %v3390_v0 }
 0x2b7   : > { %3163 = vmatpush3.bf16.msra.mxu1 %v4278_v50 }
 0x2b8   : > { %3164 = vmatprep.subr.bf16.mxu1 %v3390_v0 }
 0x2b9   : > { %3142 = vmatpush3.bf16.msra.mxu0 %v4279_v58 }
 0x2ba   : > { %3143 = vmatprep.subr.bf16.mxu0 %v3390_v0 }
 0x2bb   : > { %3166 = vmatpush3.bf16.msra.mxu1 %v4280_v59 }
 0x2bc   : > { %3167 = vmatprep.subr.bf16.mxu1 %v3390_v0 }
 0x2bd   : > { %3145 = vmatpush3.bf16.msra.mxu0 %v4281_v8 }
 0x2be   : > { %3146 = vmatprep.subr.bf16.mxu0 %v3390_v0 }
 0x2bf   : > { %3169 = vmatpush3.bf16.msra.mxu1 %v4282_v9 }
 0x2c0   : > { %3170 = vmatprep.subr.bf16.mxu1 %v3390_v0 }
 0x2c1   : > { %3148 = vmatpush3.bf16.msra.mxu0 %v4283_v26 }
 0x2c2   : > { %3149 = vmatprep.subr.bf16.mxu0 %v3390_v0 }
 0x2c3   : > { %3172 = vmatpush3.bf16.msra.mxu1 %v4284_v27 }
 0x2c4   : > { %3173 = vmatprep.subr.bf16.mxu1 %v3390_v0 }
 0x2c5   : > { %3151 = vmatpush3.bf16.msra.mxu0 %v3968_v2  ;;  %v1697_v2 = vld [vmem:[#allocation5 + $0x48] sm:$0xff] }
 0x2c6   : > { %3152 = vmatprep.subr.bf16.mxu0 %v3390_v0 }
 0x2c7   : > { %3175 = vmatpush3.bf16.msra.mxu1 %v3970_v15  ;;  %v1698_v15 = vld [vmem:[#allocation5 + $0x50] sm:$0xff] }
 0x2c8   : > { %3176 = vmatprep.subr.bf16.mxu1 %v3390_v0 }
 0x2c9   : > { %3154 = vmatpush3.bf16.msra.mxu0 %v3980_v16 }
 0x2ca   : > { %3179 = vmatprep.subr.bf16.mxu0 %v3390_v0 }
 0x2cb   : > { %3178 = vmatpush3.bf16.msra.mxu1 %v3982_v6  ;;  %v1696_v6 = vld [vmem:[#allocation5 + $0x40] sm:$0xff] }
 0x2cc   : > { %2723 = vmatmul.mubr.f32.vlgmr.msra.gmra.mrb[14].mxu0 %v1117_v34  ;;  %v3192_v16 = vpack.c.bf16 %v1697_v2, %v1696_v6 }
 0x2cd   : > { %2792 = vmatprep.mubr.msk.f32.mxu0 %vm3391_vm0, %v4271_v52  ;;  %3181 = vmatpush3.bf16.msra.mxu0 %v3180_v61  ;;  %v1699_v52 = vld [vmem:[#allocation5 + $0x58] sm:$0xff] }
 0x2ce   : > { %2758 = vmatmul.mubr.f32.vlgmr.msra.gmra.mrb[14].mxu1 %v1119_v35  ;;  %3182 = vmatprep.subr.bf16.mxu0 %v3390_v0  ;;  %v3195_v60 = vpack.c.bf16 %v1699_v52, %v1698_v15 }
 0x2d1   : > { %3184 = vmatpush3.bf16.msra.mxu0 %v3183_v20 }
 0x2d2   : > { %3185 = vmatprep.subr.bf16.mxu0 %v3390_v0 }
 0x2d5   : > { %3187 = vmatpush3.bf16.msra.mxu0 %v3186_v54 }
 0x2d6   : > { %3188 = vmatprep.subr.bf16.mxu0 %v3390_v0 }
 0x2d9   : > { %3190 = vmatpush3.bf16.msra.mxu0 %v3189_v28 }
 0x2da   : > { %3191 = vmatprep.subr.bf16.mxu0 %v3390_v0 }
 0x2dd   : > { %3193 = vmatpush3.bf16.msra.mxu0 %v3192_v16 }
 0x2de   : > { %3194 = vmatprep.subr.bf16.mxu0 %v3390_v0 }
 0x2e1   : > { %3196 = vmatpush3.bf16.msra.mxu0 %v3195_v60 }
 0x2e2   : > { %3197 = vmatprep.subr.bf16.mxu0 %v3390_v0 }
 0x2e5   : > { %3199 = vmatpush3.bf16.msra.mxu0 %v3198_v57 }
 0x2e6   : > { %3200 = vmatprep.subr.bf16.mxu0 %v3390_v0 }
 0x2e9   : > { %3202 = vmatpush3.bf16.msra.mxu0 %v3201_v1 }
 0x33f   : > { %v1194_v44 = vpop.f32.mrb[8].mxu0 }
 0x340   : > { %v2514_v43 = vpop.f32.mrb[9].mxu0 }
 0x341   : > { %v1264_v40 = vpop.f32.mrb[8].mxu1 }
 0x342   : > { %v1712_v5 = vrot.slane %v1264_v40, 7  ;;  %v2549_v7 = vpop.f32.mrb[9].mxu1 }
 0x344   : > { %v1713_v13 = vsel %vm1031_vm1, %v1712_v5, %v1194_v44 }
 0x35f   : > { %v1334_v18 = vpop.f32.mrb[10].mxu0 }
 0x360   : > { %v1714_v19 = vrot.slane %v1334_v18, 6  ;;  %v2584_v24 = vpop.f32.mrb[11].mxu0 }
 0x361   : > { %v1404_v31 = vpop.f32.mrb[10].mxu1 }
 0x362   : > { %v1715_v25 = vsel %vm1034_vm2, %v1714_v19, %v1713_v13  ;;  %v1716_v30 = vrot.slane %v1404_v31, 5  ;;  %v2619_v12 = vpop.f32.mrb[11].mxu1 }
 0x364   : > { %v1717_v0 = vsel %vm1037_vm3, %v1716_v30, %v1715_v25 }
 0x37f   : > { %v1474_v36 = vpop.f32.mrb[12].mxu0 }
 0x380   : > { %v1718_v37 = vrot.slane %v1474_v36, 4  ;;  %v2654_v45 = vpop.f32.mrb[13].mxu0 }
 0x381   : > { %v1544_v53 = vpop.f32.mrb[12].mxu1 }
 0x382   : > { %v1719_v48 = vsel %vm1040_vm4, %v1718_v37, %v1717_v0  ;;  %v1720_v3 = vrot.slane %v1544_v53, 3  ;;  %v2689_v4 = vpop.f32.mrb[13].mxu1 }
 0x384   : > { %v1721_v11 = vsel %vm1043_vm5, %v1720_v3, %v1719_v48 }
 0x39f   : > { %v1614_v14 = vpop.f32.mrb[14].mxu0 }
 0x3a0   : > { %v1722_v21 = vrot.slane %v1614_v14, 2  ;;  %v2724_v22 = vpop.f32.mrb[15].mxu0 }
 0x3a1   : > { %v1684_v29 = vpop.f32.mrb[14].mxu1 }
 0x3a2   : > { %v1723_v32 = vsel %vm1046_vm6, %v1722_v21, %v1721_v11  ;;  %v1724_v39 = vrot.slane %v1684_v29, 1  ;;  %v2759_v41 = vpop.f32.mrb[15].mxu1 }
 0x3a4   : > { %v1725_v49 = vsel %vm1049_vm7, %v1724_v39, %v1723_v32 }
 0x3a5   : > { %2793 = vmatmul.mubr.f32.vlgmr.msra.gmra.mrb[16].mxu0 %v1725_v49 }
 0x478   : > { %v1793_v47 = vpop.f32.mrb[16].mxu0 }
 0x479   : > { %1797 = vst [vmem:[%s255_s23] sm:$0xff] %v1793_v47  ;;  %v2794_v50 = vpop.f32.mrb[17].mxu0 }
 0x47a   : > { %3322 = shalt.err (!%p3319_p1)
}
 0x47b   : > { %s3323_s12 = scalar_lea.hbm %s4179_s9, 128  ;;  %s3327_s26 = scalar_lea.hbm %s4227_s4, 256 }
 0x47c   : > { %p3324_p4 = scmp.ne.s32.totalorder %s4179_s9, %s3323_s12  ;;  %p3328_p11 = scmp.lt.u32.totalorder %s4179_s9, %s4227_s4 }
 0x47d   : > { %p3329_p12 = scmp.lt.u32.totalorder %s3327_s26, %s3323_s12  ;;  %p3331_p3 = scmp.lt.u32.totalorder %s3323_s12, %s4179_s9 }
 0x47e   : > { %p3325_p5 = pnand %p3324_p4, %p4285_p2 }
 0x47f   : > { %p3330_p13 = por %p3329_p12, %p3328_p11 }
 0x480   : > { %p3326_p6 = pneg %p3325_p5 }
 0x481   : > { %p3332_p7 = por %p3331_p3, %p3330_p13 }
 0x483   : > { %p3333_p8 = pnand %p3332_p7, %p3326_p6 }
 0x485   : > { %3336 = shalt.err (!%p3333_p8)
}
 0x486   : > { %3216 = dma.vmem_to_hbm [thread:$0]  (%p4285_p2), %s4181_s30, 128, %s4179_s9, %s1799_s10  }
 0x487 PF: > { %s1824_s5 = sand.u32 1, %s3367_s15   ;;  %p4286_p9 = scmp.ne.s32.totalorder %s4251_s28, 0 }
 0x488   : > { %s1825_s13 = scalar_lea.sflag [#allocation4], %s1824_s5 }
 0x489   : > { %p3223_p10 = pnand %p1895_p0, %p4286_p9 }
 0x48b   : > { %3362 = dma.done.wait (!%p3223_p10), %s1825_s13, 128  }
 0x48c   : > { %3364 = vsyncadd (!%p3223_p10), %s1825_s13, 4294967168  ;;  %p18_p1 = scmp.ge.s32.totalorder %s3446_s21, 4   ;;  %s4287_s15 = smov %s3371_s16 }
 0x48d   : > { %s4288_s16 = smov %s3375_s17  ;;  %s4289_s17 = smov %s3458_s24 }
 0x48e   : > { %s4290_s18 = smov %s3446_s21  ;;  %20 = sbr.rel (!%p18_p1) target bundleno = 6 (0x6), region = 90 }
 0x495   :  { %1830 = vsyncpa [#allocation3], 1 }
 0x496   :  { %1832 = vsyncpa [#allocation3 + $0x1], 1 }
 0x497   :  { %1833 = vsyncpa [#allocation6], 1 }
 0x498   :  { %1834 = vsyncpa [#allocation4], 1 }
 0x499   :  { %1836 = vsyncpa [#allocation4 + $0x1], 1 }

</bundles_post_ra>
